<compile_context>
chip_gen: v5e
topology: v5e:2x2
jax: 0.10.0
libtpu: 0.0.40
codegen_flags: <defaults>
</compile_context>

<pallas_src>
import functools

import jax
import jax.numpy as jnp
from jax.experimental import pallas as pl
from jax.experimental.pallas import tpu as pltpu  # noqa: F401  (imported per convention)


# -----------------------------------------------------------------------------
# Single fused Pallas kernel: encoder (L layers) x 2 branches + siamese head
# -----------------------------------------------------------------------------
def siamese_kernel(
    video0_ref, video1_ref,      # (S, N, E) f32
    audio0_ref, audio1_ref,      # (S, A)    f32
    wqkv_ref,                    # (L, E, 3E)  bf16   fused in_proj.T, q-scale folded in
    wo_ref,                      # (L, E, E)   bf16   out_proj.T
    w1_ref,                      # (L, E, F)   bf16   linear1.T
    w2_ref,                      # (L, F, E)   bf16   linear2.T
    wfc_ref,                     # (E+A, FC)   bf16   fc.T  (video rows then audio rows)
    wcc_ref,                     # (2*FC, 64)  bf16   concat_branches.T
    wout_ref,                    # (64, 128)   bf16   out.T zero-padded to 128 lanes
    vec_ref,                     # (8L+3, 128) f32    packed biases / LayerNorm params
    o_ref,                       # (S, 128)    f32    lane-dense output slab ([:, :2] is real)
    *, n_head, n_layers,
):
    f32 = jnp.float32
    bf16 = jnp.bfloat16
    H = n_head
    B = 2                                             # siamese branches
    S, nbatch, E = video0_ref.shape
    Dh = E // H
    F = w1_ref.shape[-1]
    FC = wfc_ref.shape[-1]

    # Only batch element N-1 of the encoder output is consumed downstream; slice it here and
    # stack the two branches along the row (M) dimension -> every projection is ONE matmul.
    x = jnp.concatenate(
        [video0_ref[:, nbatch - 1:nbatch, :].reshape(S, E),
         video1_ref[:, nbatch - 1:nbatch, :].reshape(S, E)], axis=0)          # (B*S, E) f32
    audio = jnp.concatenate([audio0_ref[...], audio1_ref[...]], axis=0)       # (B*S, A) f32

    def vrow(r, n):                                   # (1, n) slice of the packed f32 buffer
        return vec_ref[r:r + 1, 0:n]

    def layer_norm(v, gamma, beta):
        mu = jnp.mean(v, axis=-1, keepdims=True)
        var = jnp.mean((v - mu) ** 2, axis=-1, keepdims=True)
        return (v - mu) * jax.lax.rsqrt(var + 1e-5) * gamma + beta

    def split_heads(t):                               # (B*S, E) -> (H*B, S, Dh), head-major
        t3 = t.reshape(B, S, E)
        return jnp.concatenate(
            [t3[:, :, h * Dh:(h + 1) * Dh] for h in range(H)], axis=0)

    for l in range(n_layers):
        r0 = 8 * l
        # ---- self-attention: fused QKV projection (1/sqrt(Dh) already folded into Wq/bq) ----
        qkv = jnp.dot(x.astype(bf16), wqkv_ref[l],
                      preferred_element_type=f32) + vrow(r0 + 0, 3 * E)       # (B*S, 3E)
        q_bh = split_heads(qkv[:, 0:E]).astype(bf16)                          # (H*B, S, Dh)
        k_bh = split_heads(qkv[:, E:2 * E]).astype(bf16)
        v_bh = split_heads(qkv[:, 2 * E:3 * E]).astype(bf16)

        s = jnp.einsum('xsd,xtd->xst', q_bh, k_bh,
                       preferred_element_type=f32)                            # (H*B, S, S)
        s = s - jnp.max(s, axis=-1, keepdims=True)
        p = jnp.exp(s)
        p = p * pl.reciprocal(jnp.sum(p, axis=-1, keepdims=True), approx=True)
        ctx = jnp.einsum('xst,xtd->xsd', p.astype(bf16), v_bh,
                         preferred_element_type=f32)                          # (H*B, S, Dh)

        # merge heads along features (head-major, matches torch concat) + ONE output proj
        ctx = jnp.concatenate([ctx[h * B:(h + 1) * B] for h in range(H)], axis=-1)  # (B,S,E)
        attn = jnp.dot(ctx.reshape(B * S, E).astype(bf16), wo_ref[l],
                       preferred_element_type=f32) + vrow(r0 + 1, E)          # (B*S, E)

        # residual + layernorm1 (post-norm, PyTorch default norm_first=False)
        x = layer_norm(x + attn, vrow(r0 + 2, E), vrow(r0 + 3, E))

        # ---- feed forward (dropout = identity in eval; relu = default activation) ----
        hdn = jnp.maximum(jnp.dot(x.astype(bf16), w1_ref[l],
                                  preferred_element_type=f32) + vrow(r0 + 4, F), 0.0)
        ff = jnp.dot(hdn.astype(bf16), w2_ref[l],
                     preferred_element_type=f32) + vrow(r0 + 5, E)
        x = layer_norm(x + ff, vrow(r0 + 6, E), vrow(r0 + 7, E))

    # ---- siamese head ----
    rh = 8 * n_layers
    # fc(cat([x_last, audio], dim=1)): lane-concat activations -> single (E+A, FC) matmul
    xa = jnp.concatenate([x, audio], axis=-1).astype(bf16)                    # (B*S, E+A)
    f = jnp.dot(xa, wfc_ref[...], preferred_element_type=f32) + vrow(rh + 0, FC)
    # dropout -> identity.  concat_branches(cat([f0, f1], dim=1)): lane-concat the branches.
    f = f.reshape(B, S, FC)
    fcat = jnp.concatenate([f[0], f[1]], axis=-1)                             # (S, 2*FC)
    h = jnp.dot(fcat.astype(bf16), wcc_ref[...],
                preferred_element_type=f32) + vrow(rh + 1, wcc_ref.shape[-1])  # (S, 64)
    # dropout_last -> identity; out(relu(h)).  Wout/bout zero-padded to 128 lanes so the final
    # store is a full unmasked (S, 128) tile; wrapper slices [:, :2].
    h = jnp.maximum(h, 0.0)
    o_ref[...] = jnp.dot(h.astype(bf16), wout_ref[...],
                         preferred_element_type=f32) + vrow(rh + 2, 128)      # (S, 128)


# -----------------------------------------------------------------------------
# One-time parameter preparation (transposes / scale folding / packing / bf16)
# -----------------------------------------------------------------------------
def prepare_params(params, *, n_head):
    H = n_head
    wdt = jnp.bfloat16
    layers = params["layers"]
    L = len(layers)
    E = layers[0]["wo"].shape[0]
    assert E % H == 0
    Dh = E // H
    scale = 1.0 / (Dh ** 0.5)

    def pad_row(v):
        return jnp.zeros((128,), jnp.float32).at[:v.shape[0]].set(v.astype(jnp.float32))

    wqkv_l, wo_l, w1_l, w2_l, vec_rows = [], [], [], [], []
    for lp in layers:
        wqkvT = lp["wqkv"].T                                   # (E, 3E), cols [0:E] = Q
        wqkvT = jnp.concatenate([wqkvT[:, :E] * scale, wqkvT[:, E:]], axis=1)
        bqkv = jnp.concatenate([lp["bqkv"][:E] * scale, lp["bqkv"][E:]])
        wqkv_l.append(wqkvT.astype(wdt))
        wo_l.append(lp["wo"].T.astype(wdt))                    # (E, E)
        w1_l.append(lp["w1"].T.astype(wdt))                    # (E, F)
        w2_l.append(lp["w2"].T.astype(wdt))                    # (F, E)
        vec_rows += [pad_row(bqkv), pad_row(lp["bo"]),
                     pad_row(lp["ln1_g"]), pad_row(lp["ln1_b"]),
                     pad_row(lp["b1"]), pad_row(lp["b2"]),
                     pad_row(lp["ln2_g"]), pad_row(lp["ln2_b"])]

    out_in = params["out_w"].shape[1]                          # 64
    out_dim = params["out_w"].shape[0]                         # 2
    wout = jnp.zeros((out_in, 128), jnp.float32)
    wout = wout.at[:, :out_dim].set(params["out_w"].T).astype(wdt)   # (64, 128) zero-padded
    vec_rows += [pad_row(params["fc_b"]), pad_row(params["cc_b"]), pad_row(params["out_b"])]

    operands = (
        jnp.stack(wqkv_l),                 # (L, E, 3E) bf16
        jnp.stack(wo_l),                   # (L, E, E)  bf16
        jnp.stack(w1_l),                   # (L, E, F)  bf16
        jnp.stack(w2_l),                   # (L, F, E)  bf16
        params["fc_w"].T.astype(wdt),      # (E+A, FC)  bf16
        params["cc_w"].T.astype(wdt),      # (2*FC, 64) bf16
        wout,                              # (64, 128)  bf16
        jnp.stack(vec_rows),               # (8L+3, 128) f32
    )
    return dict(n_head=H, n_layers=L, out_dim=out_dim, operands=operands)


# -----------------------------------------------------------------------------
# Forward wrapper: one jitted pallas_call, no grid (everything resident in VMEM)
# -----------------------------------------------------------------------------
@functools.partial(jax.jit, static_argnums=(0, 1, 2))
def _forward(n_head, n_layers, out_dim, operands, video0, audio0, video1, audio1):
    S = video0.shape[0]
    kernel = functools.partial(siamese_kernel, n_head=n_head, n_layers=n_layers)
    out = pl.pallas_call(
        kernel,
        out_shape=jax.ShapeDtypeStruct((S, 128), jnp.float32),
    )(video0, video1, audio0, audio1, *operands)
    return out[:, :out_dim]


def transformer_siamese_forward(prepared, inputs):
    video0, audio0, video1, audio1 = inputs
    return _forward(prepared["n_head"], prepared["n_layers"], prepared["out_dim"],
                    prepared["operands"], video0, audio0, video1, audio1)


# -----------------------------------------------------------------------------
# Deterministic parameter init (synthetic; shapes from the module's __init__)
# -----------------------------------------------------------------------------
def init_params(key, *, E, F, L, A, FC):
    keys = iter(jax.random.split(key, 8 * L + 8))

    def nrm(shape, scale=0.05):
        return scale * jax.random.normal(next(keys), shape, jnp.float32)

    layers = []
    for _ in range(L):
        layers.append(dict(
            wqkv=nrm((3 * E, E)), bqkv=nrm((3 * E,)),
            wo=nrm((E, E)), bo=nrm((E,)),
            ln1_g=jnp.ones((E,), jnp.float32), ln1_b=jnp.zeros((E,), jnp.float32),
            w1=nrm((F, E)), b1=nrm((F,)),
            w2=nrm((E, F)), b2=nrm((E,)),
            ln2_g=jnp.ones((E,), jnp.float32), ln2_b=jnp.zeros((E,), jnp.float32),
        ))
    return dict(
        layers=layers,
        fc_w=nrm((FC, E + A)), fc_b=nrm((FC,)),
        cc_w=nrm((64, 2 * FC)), cc_b=nrm((64,)),
        out_w=nrm((2, 64)), out_b=nrm((2,)),
    )


# -----------------------------------------------------------------------------
if __name__ == "__main__":
    # module hyper-parameters
    n_head = 2
    dim_feedforward = 64
    enc_layers = 2
    fc_dim = 32
    video_embedding_dim = 32
    audio_embedding_dim = 64
    # input sizes (PyTorch batch_first=False convention)
    S, N = 8, 2

    key = jax.random.PRNGKey(0)
    pkey, k0, k1, k2, k3 = jax.random.split(key, 5)
    raw_params = init_params(pkey, E=video_embedding_dim, F=dim_feedforward,
                             L=enc_layers, A=audio_embedding_dim, FC=fc_dim)
    prepared = prepare_params(raw_params, n_head=n_head)

    video0 = jax.random.normal(k0, (S, N, video_embedding_dim), jnp.float32)
    audio0 = jax.random.normal(k1, (S, audio_embedding_dim), jnp.float32)
    video1 = jax.random.normal(k2, (S, N, video_embedding_dim), jnp.float32)
    audio1 = jax.random.normal(k3, (S, audio_embedding_dim), jnp.float32)

    out = transformer_siamese_forward(prepared, (video0, audio0, video1, audio1))
    out = jax.block_until_ready(out)
    assert out.shape == (S, 2) and out.dtype == jnp.float32
    print("KERNEL_OK")
</pallas_src>

<mosaic_0001>
module attributes {stable_mosaic.version = 11 : i64} {
  func.func @siamese_kernel(%arg0: memref<8x2x32xf32, #tpu.memory_space<vmem>>, %arg1: memref<8x2x32xf32, #tpu.memory_space<vmem>>, %arg2: memref<8x64xf32, #tpu.memory_space<vmem>>, %arg3: memref<8x64xf32, #tpu.memory_space<vmem>>, %arg4: memref<2x32x96xbf16, #tpu.memory_space<vmem>>, %arg5: memref<2x32x32xbf16, #tpu.memory_space<vmem>>, %arg6: memref<2x32x64xbf16, #tpu.memory_space<vmem>>, %arg7: memref<2x64x32xbf16, #tpu.memory_space<vmem>>, %arg8: memref<96x32xbf16, #tpu.memory_space<vmem>>, %arg9: memref<64x64xbf16, #tpu.memory_space<vmem>>, %arg10: memref<64x128xbf16, #tpu.memory_space<vmem>>, %arg11: memref<19x128xf32, #tpu.memory_space<vmem>>, %arg12: memref<8x128xf32, #tpu.memory_space<vmem>>) attributes {dimension_semantics = [], scalar_prefetch = 0 : i64, scratch_operands = 0 : i64, tpu.core_type = #tpu.core_type<tc>} {
    %c0 = arith.constant 0 : index
    %c1 = arith.constant 1 : index
    %c0_0 = arith.constant 0 : index
    %0 = vector.load %arg0[%c0, %c1, %c0_0] : memref<8x2x32xf32, #tpu.memory_space<vmem>>, vector<8x1x32xf32>
    %1 = vector.shape_cast %0 : vector<8x1x32xf32> to vector<8x32xf32>
    %c0_1 = arith.constant 0 : index
    %c1_2 = arith.constant 1 : index
    %c0_3 = arith.constant 0 : index
    %2 = vector.load %arg1[%c0_1, %c1_2, %c0_3] : memref<8x2x32xf32, #tpu.memory_space<vmem>>, vector<8x1x32xf32>
    %3 = vector.shape_cast %2 : vector<8x1x32xf32> to vector<8x32xf32>
    %4 = tpu.concatenate %1, %3 in 0 : vector<8x32xf32>, vector<8x32xf32> -> vector<16x32xf32>
    %c0_4 = arith.constant 0 : index
    %c0_5 = arith.constant 0 : index
    %5 = vector.load %arg2[%c0_4, %c0_5] : memref<8x64xf32, #tpu.memory_space<vmem>>, vector<8x64xf32>
    %c0_6 = arith.constant 0 : index
    %c0_7 = arith.constant 0 : index
    %6 = vector.load %arg3[%c0_6, %c0_7] : memref<8x64xf32, #tpu.memory_space<vmem>>, vector<8x64xf32>
    %7 = tpu.concatenate %5, %6 in 0 : vector<8x64xf32>, vector<8x64xf32> -> vector<16x64xf32>
    %8 = arith.truncf %4 : vector<16x32xf32> to vector<16x32xbf16>
    %c0_8 = arith.constant 0 : index
    %c0_9 = arith.constant 0 : index
    %c0_10 = arith.constant 0 : index
    %9 = vector.load %arg4[%c0_8, %c0_9, %c0_10] : memref<2x32x96xbf16, #tpu.memory_space<vmem>>, vector<1x32x96xbf16>
    %10 = vector.shape_cast %9 : vector<1x32x96xbf16> to vector<32x96xbf16>
    %cst = arith.constant dense<0.000000e+00> : vector<16x96xf32>
    %11 = tpu.matmul %8, %10, %cst {dimension_numbers = #tpu.dot_dimension_numbers<[1], [0], [0], [1], [0, 0, 1, 1], [], []>} : vector<16x32xbf16>, vector<32x96xbf16>, vector<16x96xf32> -> vector<16x96xf32>
    %c0_11 = arith.constant 0 : index
    %c0_12 = arith.constant 0 : index
    %12 = vector.load %arg11[%c0_11, %c0_12] : memref<19x128xf32, #tpu.memory_space<vmem>>, vector<1x96xf32>
    %13 = vector.broadcast %12 : vector<1x96xf32> to vector<16x96xf32>
    %14 = arith.addf %11, %13 : vector<16x96xf32>
    %15 = vector.extract_strided_slice %14 {offsets = [0, 0], sizes = [16, 32], strides = [1, 1]} : vector<16x96xf32> to vector<16x32xf32>
    %16 = vector.shape_cast %15 : vector<16x32xf32> to vector<2x8x32xf32>
    %17 = vector.extract_strided_slice %16 {offsets = [0, 0, 0], sizes = [2, 8, 16], strides = [1, 1, 1]} : vector<2x8x32xf32> to vector<2x8x16xf32>
    %18 = vector.extract_strided_slice %16 {offsets = [0, 0, 16], sizes = [2, 8, 16], strides = [1, 1, 1]} : vector<2x8x32xf32> to vector<2x8x16xf32>
    %19 = tpu.concatenate %17, %18 in 0 : vector<2x8x16xf32>, vector<2x8x16xf32> -> vector<4x8x16xf32>
    %20 = arith.truncf %19 : vector<4x8x16xf32> to vector<4x8x16xbf16>
    %21 = vector.extract_strided_slice %14 {offsets = [0, 32], sizes = [16, 32], strides = [1, 1]} : vector<16x96xf32> to vector<16x32xf32>
    %22 = vector.shape_cast %21 : vector<16x32xf32> to vector<2x8x32xf32>
    %23 = vector.extract_strided_slice %22 {offsets = [0, 0, 0], sizes = [2, 8, 16], strides = [1, 1, 1]} : vector<2x8x32xf32> to vector<2x8x16xf32>
    %24 = vector.extract_strided_slice %22 {offsets = [0, 0, 16], sizes = [2, 8, 16], strides = [1, 1, 1]} : vector<2x8x32xf32> to vector<2x8x16xf32>
    %25 = tpu.concatenate %23, %24 in 0 : vector<2x8x16xf32>, vector<2x8x16xf32> -> vector<4x8x16xf32>
    %26 = arith.truncf %25 : vector<4x8x16xf32> to vector<4x8x16xbf16>
    %27 = vector.extract_strided_slice %14 {offsets = [0, 64], sizes = [16, 32], strides = [1, 1]} : vector<16x96xf32> to vector<16x32xf32>
    %28 = vector.shape_cast %27 : vector<16x32xf32> to vector<2x8x32xf32>
    %29 = vector.extract_strided_slice %28 {offsets = [0, 0, 0], sizes = [2, 8, 16], strides = [1, 1, 1]} : vector<2x8x32xf32> to vector<2x8x16xf32>
    %30 = vector.extract_strided_slice %28 {offsets = [0, 0, 16], sizes = [2, 8, 16], strides = [1, 1, 1]} : vector<2x8x32xf32> to vector<2x8x16xf32>
    %31 = tpu.concatenate %29, %30 in 0 : vector<2x8x16xf32>, vector<2x8x16xf32> -> vector<4x8x16xf32>
    %32 = arith.truncf %31 : vector<4x8x16xf32> to vector<4x8x16xbf16>
    "tpu.trace_start"() <{level = 10 : i32, message = "xsd,xtd->xst"}> : () -> ()
    %cst_13 = arith.constant dense<0.000000e+00> : vector<4x8x8xf32>
    %33 = tpu.matmul %20, %26, %cst_13 {dimension_numbers = #tpu.dot_dimension_numbers<[2], [2], [1], [1], [0, 0, 0, 1, 1, 1], [0], [0]>} : vector<4x8x16xbf16>, vector<4x8x16xbf16>, vector<4x8x8xf32> -> vector<4x8x8xf32>
    "tpu.trace_stop"() : () -> ()
    %cst_14 = arith.constant dense<0xFF800000> : vector<4x8xf32>
    %34 = vector.multi_reduction <maximumf>, %33, %cst_14 [2] : vector<4x8x8xf32> to vector<4x8xf32>
    %35 = vector.shape_cast %34 : vector<4x8xf32> to vector<4x8x1xf32>
    %36 = vector.broadcast %35 : vector<4x8x1xf32> to vector<4x8x8xf32>
    %37 = arith.subf %33, %36 : vector<4x8x8xf32>
    %38 = math.exp %37 : vector<4x8x8xf32>
    %cst_15 = arith.constant dense<0.000000e+00> : vector<4x8xf32>
    %39 = vector.multi_reduction <add>, %38, %cst_15 [2] : vector<4x8x8xf32> to vector<4x8xf32>
    %40 = vector.shape_cast %39 : vector<4x8xf32> to vector<4x8x1xf32>
    %41 = tpu.reciprocal %40 {approx = true} : vector<4x8x1xf32> -> vector<4x8x1xf32>
    %42 = vector.broadcast %41 : vector<4x8x1xf32> to vector<4x8x8xf32>
    %43 = arith.mulf %38, %42 : vector<4x8x8xf32>
    %44 = arith.truncf %43 : vector<4x8x8xf32> to vector<4x8x8xbf16>
    "tpu.trace_start"() <{level = 10 : i32, message = "xst,xtd->xsd"}> : () -> ()
    %cst_16 = arith.constant dense<0.000000e+00> : vector<4x8x16xf32>
    %45 = tpu.matmul %44, %32, %cst_16 {dimension_numbers = #tpu.dot_dimension_numbers<[2], [1], [1], [2], [0, 0, 0, 1, 1, 2], [0], [0]>} : vector<4x8x8xbf16>, vector<4x8x16xbf16>, vector<4x8x16xf32> -> vector<4x8x16xf32>
    "tpu.trace_stop"() : () -> ()
    %46 = vector.extract_strided_slice %45 {offsets = [0, 0, 0], sizes = [2, 8, 16], strides = [1, 1, 1]} : vector<4x8x16xf32> to vector<2x8x16xf32>
    %47 = vector.extract_strided_slice %45 {offsets = [2, 0, 0], sizes = [2, 8, 16], strides = [1, 1, 1]} : vector<4x8x16xf32> to vector<2x8x16xf32>
    %48 = tpu.concatenate %46, %47 in 2 : vector<2x8x16xf32>, vector<2x8x16xf32> -> vector<2x8x32xf32>
    %49 = vector.shape_cast %48 : vector<2x8x32xf32> to vector<16x32xf32>
    %50 = arith.truncf %49 : vector<16x32xf32> to vector<16x32xbf16>
    %c0_17 = arith.constant 0 : index
    %c0_18 = arith.constant 0 : index
    %c0_19 = arith.constant 0 : index
    %51 = vector.load %arg5[%c0_17, %c0_18, %c0_19] : memref<2x32x32xbf16, #tpu.memory_space<vmem>>, vector<1x32x32xbf16>
    %52 = vector.shape_cast %51 : vector<1x32x32xbf16> to vector<32x32xbf16>
    %cst_20 = arith.constant dense<0.000000e+00> : vector<16x32xf32>
    %53 = tpu.matmul %50, %52, %cst_20 {dimension_numbers = #tpu.dot_dimension_numbers<[1], [0], [0], [1], [0, 0, 1, 1], [], []>} : vector<16x32xbf16>, vector<32x32xbf16>, vector<16x32xf32> -> vector<16x32xf32>
    %c1_21 = arith.constant 1 : index
    %c0_22 = arith.constant 0 : index
    %54 = vector.load %arg11[%c1_21, %c0_22] : memref<19x128xf32, #tpu.memory_space<vmem>>, vector<1x32xf32>
    %55 = vector.broadcast %54 : vector<1x32xf32> to vector<16x32xf32>
    %56 = arith.addf %53, %55 : vector<16x32xf32>
    %57 = arith.addf %4, %56 : vector<16x32xf32>
    %c2 = arith.constant 2 : index
    %c0_23 = arith.constant 0 : index
    %58 = vector.load %arg11[%c2, %c0_23] : memref<19x128xf32, #tpu.memory_space<vmem>>, vector<1x32xf32>
    %c3 = arith.constant 3 : index
    %c0_24 = arith.constant 0 : index
    %59 = vector.load %arg11[%c3, %c0_24] : memref<19x128xf32, #tpu.memory_space<vmem>>, vector<1x32xf32>
    %cst_25 = arith.constant dense<0.000000e+00> : vector<16xf32>
    %60 = vector.multi_reduction <add>, %57, %cst_25 [1] : vector<16x32xf32> to vector<16xf32>
    %61 = vector.shape_cast %60 : vector<16xf32> to vector<16x1xf32>
    %cst_26 = arith.constant 3.200000e+01 : f32
    %62 = vector.broadcast %cst_26 : f32 to vector<16x1xf32>
    %63 = arith.divf %61, %62 : vector<16x1xf32>
    %64 = vector.broadcast %63 : vector<16x1xf32> to vector<16x32xf32>
    %65 = arith.subf %57, %64 : vector<16x32xf32>
    %66 = arith.mulf %65, %65 : vector<16x32xf32>
    %cst_27 = arith.constant dense<0.000000e+00> : vector<16xf32>
    %67 = vector.multi_reduction <add>, %66, %cst_27 [1] : vector<16x32xf32> to vector<16xf32>
    %68 = vector.shape_cast %67 : vector<16xf32> to vector<16x1xf32>
    %cst_28 = arith.constant 3.200000e+01 : f32
    %69 = vector.broadcast %cst_28 : f32 to vector<16x1xf32>
    %70 = arith.divf %68, %69 : vector<16x1xf32>
    %71 = vector.broadcast %63 : vector<16x1xf32> to vector<16x32xf32>
    %72 = arith.subf %57, %71 : vector<16x32xf32>
    %cst_29 = arith.constant 9.99999974E-6 : f32
    %73 = vector.broadcast %cst_29 : f32 to vector<16x1xf32>
    %74 = arith.addf %70, %73 : vector<16x1xf32>
    %75 = math.rsqrt %74 : vector<16x1xf32>
    %76 = vector.broadcast %75 : vector<16x1xf32> to vector<16x32xf32>
    %77 = arith.mulf %72, %76 : vector<16x32xf32>
    %78 = vector.broadcast %58 : vector<1x32xf32> to vector<16x32xf32>
    %79 = arith.mulf %77, %78 : vector<16x32xf32>
    %80 = vector.broadcast %59 : vector<1x32xf32> to vector<16x32xf32>
    %81 = arith.addf %79, %80 : vector<16x32xf32>
    %82 = arith.truncf %81 : vector<16x32xf32> to vector<16x32xbf16>
    %c0_30 = arith.constant 0 : index
    %c0_31 = arith.constant 0 : index
    %c0_32 = arith.constant 0 : index
    %83 = vector.load %arg6[%c0_30, %c0_31, %c0_32] : memref<2x32x64xbf16, #tpu.memory_space<vmem>>, vector<1x32x64xbf16>
    %84 = vector.shape_cast %83 : vector<1x32x64xbf16> to vector<32x64xbf16>
    %cst_33 = arith.constant dense<0.000000e+00> : vector<16x64xf32>
    %85 = tpu.matmul %82, %84, %cst_33 {dimension_numbers = #tpu.dot_dimension_numbers<[1], [0], [0], [1], [0, 0, 1, 1], [], []>} : vector<16x32xbf16>, vector<32x64xbf16>, vector<16x64xf32> -> vector<16x64xf32>
    %c4 = arith.constant 4 : index
    %c0_34 = arith.constant 0 : index
    %86 = vector.load %arg11[%c4, %c0_34] : memref<19x128xf32, #tpu.memory_space<vmem>>, vector<1x64xf32>
    %87 = vector.broadcast %86 : vector<1x64xf32> to vector<16x64xf32>
    %88 = arith.addf %85, %87 : vector<16x64xf32>
    %cst_35 = arith.constant 0.000000e+00 : f32
    %89 = vector.broadcast %cst_35 : f32 to vector<16x64xf32>
    %90 = arith.maximumf %88, %89 : vector<16x64xf32>
    %91 = arith.truncf %90 : vector<16x64xf32> to vector<16x64xbf16>
    %c0_36 = arith.constant 0 : index
    %c0_37 = arith.constant 0 : index
    %c0_38 = arith.constant 0 : index
    %92 = vector.load %arg7[%c0_36, %c0_37, %c0_38] : memref<2x64x32xbf16, #tpu.memory_space<vmem>>, vector<1x64x32xbf16>
    %93 = vector.shape_cast %92 : vector<1x64x32xbf16> to vector<64x32xbf16>
    %cst_39 = arith.constant dense<0.000000e+00> : vector<16x32xf32>
    %94 = tpu.matmul %91, %93, %cst_39 {dimension_numbers = #tpu.dot_dimension_numbers<[1], [0], [0], [1], [0, 0, 1, 1], [], []>} : vector<16x64xbf16>, vector<64x32xbf16>, vector<16x32xf32> -> vector<16x32xf32>
    %c5 = arith.constant 5 : index
    %c0_40 = arith.constant 0 : index
    %95 = vector.load %arg11[%c5, %c0_40] : memref<19x128xf32, #tpu.memory_space<vmem>>, vector<1x32xf32>
    %96 = vector.broadcast %95 : vector<1x32xf32> to vector<16x32xf32>
    %97 = arith.addf %94, %96 : vector<16x32xf32>
    %98 = arith.addf %81, %97 : vector<16x32xf32>
    %c6 = arith.constant 6 : index
    %c0_41 = arith.constant 0 : index
    %99 = vector.load %arg11[%c6, %c0_41] : memref<19x128xf32, #tpu.memory_space<vmem>>, vector<1x32xf32>
    %c7 = arith.constant 7 : index
    %c0_42 = arith.constant 0 : index
    %100 = vector.load %arg11[%c7, %c0_42] : memref<19x128xf32, #tpu.memory_space<vmem>>, vector<1x32xf32>
    %cst_43 = arith.constant dense<0.000000e+00> : vector<16xf32>
    %101 = vector.multi_reduction <add>, %98, %cst_43 [1] : vector<16x32xf32> to vector<16xf32>
    %102 = vector.shape_cast %101 : vector<16xf32> to vector<16x1xf32>
    %cst_44 = arith.constant 3.200000e+01 : f32
    %103 = vector.broadcast %cst_44 : f32 to vector<16x1xf32>
    %104 = arith.divf %102, %103 : vector<16x1xf32>
    %105 = vector.broadcast %104 : vector<16x1xf32> to vector<16x32xf32>
    %106 = arith.subf %98, %105 : vector<16x32xf32>
    %107 = arith.mulf %106, %106 : vector<16x32xf32>
    %cst_45 = arith.constant dense<0.000000e+00> : vector<16xf32>
    %108 = vector.multi_reduction <add>, %107, %cst_45 [1] : vector<16x32xf32> to vector<16xf32>
    %109 = vector.shape_cast %108 : vector<16xf32> to vector<16x1xf32>
    %cst_46 = arith.constant 3.200000e+01 : f32
    %110 = vector.broadcast %cst_46 : f32 to vector<16x1xf32>
    %111 = arith.divf %109, %110 : vector<16x1xf32>
    %112 = vector.broadcast %104 : vector<16x1xf32> to vector<16x32xf32>
    %113 = arith.subf %98, %112 : vector<16x32xf32>
    %cst_47 = arith.constant 9.99999974E-6 : f32
    %114 = vector.broadcast %cst_47 : f32 to vector<16x1xf32>
    %115 = arith.addf %111, %114 : vector<16x1xf32>
    %116 = math.rsqrt %115 : vector<16x1xf32>
    %117 = vector.broadcast %116 : vector<16x1xf32> to vector<16x32xf32>
    %118 = arith.mulf %113, %117 : vector<16x32xf32>
    %119 = vector.broadcast %99 : vector<1x32xf32> to vector<16x32xf32>
    %120 = arith.mulf %118, %119 : vector<16x32xf32>
    %121 = vector.broadcast %100 : vector<1x32xf32> to vector<16x32xf32>
    %122 = arith.addf %120, %121 : vector<16x32xf32>
    %123 = arith.truncf %122 : vector<16x32xf32> to vector<16x32xbf16>
    %c1_48 = arith.constant 1 : index
    %c0_49 = arith.constant 0 : index
    %c0_50 = arith.constant 0 : index
    %124 = vector.load %arg4[%c1_48, %c0_49, %c0_50] : memref<2x32x96xbf16, #tpu.memory_space<vmem>>, vector<1x32x96xbf16>
    %125 = vector.shape_cast %124 : vector<1x32x96xbf16> to vector<32x96xbf16>
    %cst_51 = arith.constant dense<0.000000e+00> : vector<16x96xf32>
    %126 = tpu.matmul %123, %125, %cst_51 {dimension_numbers = #tpu.dot_dimension_numbers<[1], [0], [0], [1], [0, 0, 1, 1], [], []>} : vector<16x32xbf16>, vector<32x96xbf16>, vector<16x96xf32> -> vector<16x96xf32>
    %c8 = arith.constant 8 : index
    %c0_52 = arith.constant 0 : index
    %127 = vector.load %arg11[%c8, %c0_52] : memref<19x128xf32, #tpu.memory_space<vmem>>, vector<1x96xf32>
    %128 = vector.broadcast %127 : vector<1x96xf32> to vector<16x96xf32>
    %129 = arith.addf %126, %128 : vector<16x96xf32>
    %130 = vector.extract_strided_slice %129 {offsets = [0, 0], sizes = [16, 32], strides = [1, 1]} : vector<16x96xf32> to vector<16x32xf32>
    %131 = vector.shape_cast %130 : vector<16x32xf32> to vector<2x8x32xf32>
    %132 = vector.extract_strided_slice %131 {offsets = [0, 0, 0], sizes = [2, 8, 16], strides = [1, 1, 1]} : vector<2x8x32xf32> to vector<2x8x16xf32>
    %133 = vector.extract_strided_slice %131 {offsets = [0, 0, 16], sizes = [2, 8, 16], strides = [1, 1, 1]} : vector<2x8x32xf32> to vector<2x8x16xf32>
    %134 = tpu.concatenate %132, %133 in 0 : vector<2x8x16xf32>, vector<2x8x16xf32> -> vector<4x8x16xf32>
    %135 = arith.truncf %134 : vector<4x8x16xf32> to vector<4x8x16xbf16>
    %136 = vector.extract_strided_slice %129 {offsets = [0, 32], sizes = [16, 32], strides = [1, 1]} : vector<16x96xf32> to vector<16x32xf32>
    %137 = vector.shape_cast %136 : vector<16x32xf32> to vector<2x8x32xf32>
    %138 = vector.extract_strided_slice %137 {offsets = [0, 0, 0], sizes = [2, 8, 16], strides = [1, 1, 1]} : vector<2x8x32xf32> to vector<2x8x16xf32>
    %139 = vector.extract_strided_slice %137 {offsets = [0, 0, 16], sizes = [2, 8, 16], strides = [1, 1, 1]} : vector<2x8x32xf32> to vector<2x8x16xf32>
    %140 = tpu.concatenate %138, %139 in 0 : vector<2x8x16xf32>, vector<2x8x16xf32> -> vector<4x8x16xf32>
    %141 = arith.truncf %140 : vector<4x8x16xf32> to vector<4x8x16xbf16>
    %142 = vector.extract_strided_slice %129 {offsets = [0, 64], sizes = [16, 32], strides = [1, 1]} : vector<16x96xf32> to vector<16x32xf32>
    %143 = vector.shape_cast %142 : vector<16x32xf32> to vector<2x8x32xf32>
    %144 = vector.extract_strided_slice %143 {offsets = [0, 0, 0], sizes = [2, 8, 16], strides = [1, 1, 1]} : vector<2x8x32xf32> to vector<2x8x16xf32>
    %145 = vector.extract_strided_slice %143 {offsets = [0, 0, 16], sizes = [2, 8, 16], strides = [1, 1, 1]} : vector<2x8x32xf32> to vector<2x8x16xf32>
    %146 = tpu.concatenate %144, %145 in 0 : vector<2x8x16xf32>, vector<2x8x16xf32> -> vector<4x8x16xf32>
    %147 = arith.truncf %146 : vector<4x8x16xf32> to vector<4x8x16xbf16>
    "tpu.trace_start"() <{level = 10 : i32, message = "xsd,xtd->xst"}> : () -> ()
    %cst_53 = arith.constant dense<0.000000e+00> : vector<4x8x8xf32>
    %148 = tpu.matmul %135, %141, %cst_53 {dimension_numbers = #tpu.dot_dimension_numbers<[2], [2], [1], [1], [0, 0, 0, 1, 1, 1], [0], [0]>} : vector<4x8x16xbf16>, vector<4x8x16xbf16>, vector<4x8x8xf32> -> vector<4x8x8xf32>
    "tpu.trace_stop"() : () -> ()
    %cst_54 = arith.constant dense<0xFF800000> : vector<4x8xf32>
    %149 = vector.multi_reduction <maximumf>, %148, %cst_54 [2] : vector<4x8x8xf32> to vector<4x8xf32>
    %150 = vector.shape_cast %149 : vector<4x8xf32> to vector<4x8x1xf32>
    %151 = vector.broadcast %150 : vector<4x8x1xf32> to vector<4x8x8xf32>
    %152 = arith.subf %148, %151 : vector<4x8x8xf32>
    %153 = math.exp %152 : vector<4x8x8xf32>
    %cst_55 = arith.constant dense<0.000000e+00> : vector<4x8xf32>
    %154 = vector.multi_reduction <add>, %153, %cst_55 [2] : vector<4x8x8xf32> to vector<4x8xf32>
    %155 = vector.shape_cast %154 : vector<4x8xf32> to vector<4x8x1xf32>
    %156 = tpu.reciprocal %155 {approx = true} : vector<4x8x1xf32> -> vector<4x8x1xf32>
    %157 = vector.broadcast %156 : vector<4x8x1xf32> to vector<4x8x8xf32>
    %158 = arith.mulf %153, %157 : vector<4x8x8xf32>
    %159 = arith.truncf %158 : vector<4x8x8xf32> to vector<4x8x8xbf16>
    "tpu.trace_start"() <{level = 10 : i32, message = "xst,xtd->xsd"}> : () -> ()
    %cst_56 = arith.constant dense<0.000000e+00> : vector<4x8x16xf32>
    %160 = tpu.matmul %159, %147, %cst_56 {dimension_numbers = #tpu.dot_dimension_numbers<[2], [1], [1], [2], [0, 0, 0, 1, 1, 2], [0], [0]>} : vector<4x8x8xbf16>, vector<4x8x16xbf16>, vector<4x8x16xf32> -> vector<4x8x16xf32>
    "tpu.trace_stop"() : () -> ()
    %161 = vector.extract_strided_slice %160 {offsets = [0, 0, 0], sizes = [2, 8, 16], strides = [1, 1, 1]} : vector<4x8x16xf32> to vector<2x8x16xf32>
    %162 = vector.extract_strided_slice %160 {offsets = [2, 0, 0], sizes = [2, 8, 16], strides = [1, 1, 1]} : vector<4x8x16xf32> to vector<2x8x16xf32>
    %163 = tpu.concatenate %161, %162 in 2 : vector<2x8x16xf32>, vector<2x8x16xf32> -> vector<2x8x32xf32>
    %164 = vector.shape_cast %163 : vector<2x8x32xf32> to vector<16x32xf32>
    %165 = arith.truncf %164 : vector<16x32xf32> to vector<16x32xbf16>
    %c1_57 = arith.constant 1 : index
    %c0_58 = arith.constant 0 : index
    %c0_59 = arith.constant 0 : index
    %166 = vector.load %arg5[%c1_57, %c0_58, %c0_59] : memref<2x32x32xbf16, #tpu.memory_space<vmem>>, vector<1x32x32xbf16>
    %167 = vector.shape_cast %166 : vector<1x32x32xbf16> to vector<32x32xbf16>
    %cst_60 = arith.constant dense<0.000000e+00> : vector<16x32xf32>
    %168 = tpu.matmul %165, %167, %cst_60 {dimension_numbers = #tpu.dot_dimension_numbers<[1], [0], [0], [1], [0, 0, 1, 1], [], []>} : vector<16x32xbf16>, vector<32x32xbf16>, vector<16x32xf32> -> vector<16x32xf32>
    %c9 = arith.constant 9 : index
    %c0_61 = arith.constant 0 : index
    %169 = vector.load %arg11[%c9, %c0_61] : memref<19x128xf32, #tpu.memory_space<vmem>>, vector<1x32xf32>
    %170 = vector.broadcast %169 : vector<1x32xf32> to vector<16x32xf32>
    %171 = arith.addf %168, %170 : vector<16x32xf32>
    %172 = arith.addf %122, %171 : vector<16x32xf32>
    %c10 = arith.constant 10 : index
    %c0_62 = arith.constant 0 : index
    %173 = vector.load %arg11[%c10, %c0_62] : memref<19x128xf32, #tpu.memory_space<vmem>>, vector<1x32xf32>
    %c11 = arith.constant 11 : index
    %c0_63 = arith.constant 0 : index
    %174 = vector.load %arg11[%c11, %c0_63] : memref<19x128xf32, #tpu.memory_space<vmem>>, vector<1x32xf32>
    %cst_64 = arith.constant dense<0.000000e+00> : vector<16xf32>
    %175 = vector.multi_reduction <add>, %172, %cst_64 [1] : vector<16x32xf32> to vector<16xf32>
    %176 = vector.shape_cast %175 : vector<16xf32> to vector<16x1xf32>
    %cst_65 = arith.constant 3.200000e+01 : f32
    %177 = vector.broadcast %cst_65 : f32 to vector<16x1xf32>
    %178 = arith.divf %176, %177 : vector<16x1xf32>
    %179 = vector.broadcast %178 : vector<16x1xf32> to vector<16x32xf32>
    %180 = arith.subf %172, %179 : vector<16x32xf32>
    %181 = arith.mulf %180, %180 : vector<16x32xf32>
    %cst_66 = arith.constant dense<0.000000e+00> : vector<16xf32>
    %182 = vector.multi_reduction <add>, %181, %cst_66 [1] : vector<16x32xf32> to vector<16xf32>
    %183 = vector.shape_cast %182 : vector<16xf32> to vector<16x1xf32>
    %cst_67 = arith.constant 3.200000e+01 : f32
    %184 = vector.broadcast %cst_67 : f32 to vector<16x1xf32>
    %185 = arith.divf %183, %184 : vector<16x1xf32>
    %186 = vector.broadcast %178 : vector<16x1xf32> to vector<16x32xf32>
    %187 = arith.subf %172, %186 : vector<16x32xf32>
    %cst_68 = arith.constant 9.99999974E-6 : f32
    %188 = vector.broadcast %cst_68 : f32 to vector<16x1xf32>
    %189 = arith.addf %185, %188 : vector<16x1xf32>
    %190 = math.rsqrt %189 : vector<16x1xf32>
    %191 = vector.broadcast %190 : vector<16x1xf32> to vector<16x32xf32>
    %192 = arith.mulf %187, %191 : vector<16x32xf32>
    %193 = vector.broadcast %173 : vector<1x32xf32> to vector<16x32xf32>
    %194 = arith.mulf %192, %193 : vector<16x32xf32>
    %195 = vector.broadcast %174 : vector<1x32xf32> to vector<16x32xf32>
    %196 = arith.addf %194, %195 : vector<16x32xf32>
    %197 = arith.truncf %196 : vector<16x32xf32> to vector<16x32xbf16>
    %c1_69 = arith.constant 1 : index
    %c0_70 = arith.constant 0 : index
    %c0_71 = arith.constant 0 : index
    %198 = vector.load %arg6[%c1_69, %c0_70, %c0_71] : memref<2x32x64xbf16, #tpu.memory_space<vmem>>, vector<1x32x64xbf16>
    %199 = vector.shape_cast %198 : vector<1x32x64xbf16> to vector<32x64xbf16>
    %cst_72 = arith.constant dense<0.000000e+00> : vector<16x64xf32>
    %200 = tpu.matmul %197, %199, %cst_72 {dimension_numbers = #tpu.dot_dimension_numbers<[1], [0], [0], [1], [0, 0, 1, 1], [], []>} : vector<16x32xbf16>, vector<32x64xbf16>, vector<16x64xf32> -> vector<16x64xf32>
    %c12 = arith.constant 12 : index
    %c0_73 = arith.constant 0 : index
    %201 = vector.load %arg11[%c12, %c0_73] : memref<19x128xf32, #tpu.memory_space<vmem>>, vector<1x64xf32>
    %202 = vector.broadcast %201 : vector<1x64xf32> to vector<16x64xf32>
    %203 = arith.addf %200, %202 : vector<16x64xf32>
    %cst_74 = arith.constant 0.000000e+00 : f32
    %204 = vector.broadcast %cst_74 : f32 to vector<16x64xf32>
    %205 = arith.maximumf %203, %204 : vector<16x64xf32>
    %206 = arith.truncf %205 : vector<16x64xf32> to vector<16x64xbf16>
    %c1_75 = arith.constant 1 : index
    %c0_76 = arith.constant 0 : index
    %c0_77 = arith.constant 0 : index
    %207 = vector.load %arg7[%c1_75, %c0_76, %c0_77] : memref<2x64x32xbf16, #tpu.memory_space<vmem>>, vector<1x64x32xbf16>
    %208 = vector.shape_cast %207 : vector<1x64x32xbf16> to vector<64x32xbf16>
    %cst_78 = arith.constant dense<0.000000e+00> : vector<16x32xf32>
    %209 = tpu.matmul %206, %208, %cst_78 {dimension_numbers = #tpu.dot_dimension_numbers<[1], [0], [0], [1], [0, 0, 1, 1], [], []>} : vector<16x64xbf16>, vector<64x32xbf16>, vector<16x32xf32> -> vector<16x32xf32>
    %c13 = arith.constant 13 : index
    %c0_79 = arith.constant 0 : index
    %210 = vector.load %arg11[%c13, %c0_79] : memref<19x128xf32, #tpu.memory_space<vmem>>, vector<1x32xf32>
    %211 = vector.broadcast %210 : vector<1x32xf32> to vector<16x32xf32>
    %212 = arith.addf %209, %211 : vector<16x32xf32>
    %213 = arith.addf %196, %212 : vector<16x32xf32>
    %c14 = arith.constant 14 : index
    %c0_80 = arith.constant 0 : index
    %214 = vector.load %arg11[%c14, %c0_80] : memref<19x128xf32, #tpu.memory_space<vmem>>, vector<1x32xf32>
    %c15 = arith.constant 15 : index
    %c0_81 = arith.constant 0 : index
    %215 = vector.load %arg11[%c15, %c0_81] : memref<19x128xf32, #tpu.memory_space<vmem>>, vector<1x32xf32>
    %cst_82 = arith.constant dense<0.000000e+00> : vector<16xf32>
    %216 = vector.multi_reduction <add>, %213, %cst_82 [1] : vector<16x32xf32> to vector<16xf32>
    %217 = vector.shape_cast %216 : vector<16xf32> to vector<16x1xf32>
    %cst_83 = arith.constant 3.200000e+01 : f32
    %218 = vector.broadcast %cst_83 : f32 to vector<16x1xf32>
    %219 = arith.divf %217, %218 : vector<16x1xf32>
    %220 = vector.broadcast %219 : vector<16x1xf32> to vector<16x32xf32>
    %221 = arith.subf %213, %220 : vector<16x32xf32>
    %222 = arith.mulf %221, %221 : vector<16x32xf32>
    %cst_84 = arith.constant dense<0.000000e+00> : vector<16xf32>
    %223 = vector.multi_reduction <add>, %222, %cst_84 [1] : vector<16x32xf32> to vector<16xf32>
    %224 = vector.shape_cast %223 : vector<16xf32> to vector<16x1xf32>
    %cst_85 = arith.constant 3.200000e+01 : f32
    %225 = vector.broadcast %cst_85 : f32 to vector<16x1xf32>
    %226 = arith.divf %224, %225 : vector<16x1xf32>
    %227 = vector.broadcast %219 : vector<16x1xf32> to vector<16x32xf32>
    %228 = arith.subf %213, %227 : vector<16x32xf32>
    %cst_86 = arith.constant 9.99999974E-6 : f32
    %229 = vector.broadcast %cst_86 : f32 to vector<16x1xf32>
    %230 = arith.addf %226, %229 : vector<16x1xf32>
    %231 = math.rsqrt %230 : vector<16x1xf32>
    %232 = vector.broadcast %231 : vector<16x1xf32> to vector<16x32xf32>
    %233 = arith.mulf %228, %232 : vector<16x32xf32>
    %234 = vector.broadcast %214 : vector<1x32xf32> to vector<16x32xf32>
    %235 = arith.mulf %233, %234 : vector<16x32xf32>
    %236 = vector.broadcast %215 : vector<1x32xf32> to vector<16x32xf32>
    %237 = arith.addf %235, %236 : vector<16x32xf32>
    %238 = tpu.concatenate %237, %7 in 1 : vector<16x32xf32>, vector<16x64xf32> -> vector<16x96xf32>
    %239 = arith.truncf %238 : vector<16x96xf32> to vector<16x96xbf16>
    %c0_87 = arith.constant 0 : index
    %c0_88 = arith.constant 0 : index
    %240 = vector.load %arg8[%c0_87, %c0_88] : memref<96x32xbf16, #tpu.memory_space<vmem>>, vector<96x32xbf16>
    %cst_89 = arith.constant dense<0.000000e+00> : vector<16x32xf32>
    %241 = tpu.matmul %239, %240, %cst_89 {dimension_numbers = #tpu.dot_dimension_numbers<[1], [0], [0], [1], [0, 0, 1, 1], [], []>} : vector<16x96xbf16>, vector<96x32xbf16>, vector<16x32xf32> -> vector<16x32xf32>
    %c16 = arith.constant 16 : index
    %c0_90 = arith.constant 0 : index
    %242 = vector.load %arg11[%c16, %c0_90] : memref<19x128xf32, #tpu.memory_space<vmem>>, vector<1x32xf32>
    %243 = vector.broadcast %242 : vector<1x32xf32> to vector<16x32xf32>
    %244 = arith.addf %241, %243 : vector<16x32xf32>
    %245 = vector.shape_cast %244 : vector<16x32xf32> to vector<2x8x32xf32>
    %246 = vector.extract_strided_slice %245 {offsets = [0, 0, 0], sizes = [1, 8, 32], strides = [1, 1, 1]} : vector<2x8x32xf32> to vector<1x8x32xf32>
    %247 = vector.shape_cast %246 : vector<1x8x32xf32> to vector<8x32xf32>
    %248 = vector.extract_strided_slice %245 {offsets = [1, 0, 0], sizes = [1, 8, 32], strides = [1, 1, 1]} : vector<2x8x32xf32> to vector<1x8x32xf32>
    %249 = vector.shape_cast %248 : vector<1x8x32xf32> to vector<8x32xf32>
    %250 = tpu.concatenate %247, %249 in 1 : vector<8x32xf32>, vector<8x32xf32> -> vector<8x64xf32>
    %251 = arith.truncf %250 : vector<8x64xf32> to vector<8x64xbf16>
    %c0_91 = arith.constant 0 : index
    %c0_92 = arith.constant 0 : index
    %252 = vector.load %arg9[%c0_91, %c0_92] : memref<64x64xbf16, #tpu.memory_space<vmem>>, vector<64x64xbf16>
    %cst_93 = arith.constant dense<0.000000e+00> : vector<8x64xf32>
    %253 = tpu.matmul %251, %252, %cst_93 {dimension_numbers = #tpu.dot_dimension_numbers<[1], [0], [0], [1], [0, 0, 1, 1], [], []>} : vector<8x64xbf16>, vector<64x64xbf16>, vector<8x64xf32> -> vector<8x64xf32>
    %c17 = arith.constant 17 : index
    %c0_94 = arith.constant 0 : index
    %254 = vector.load %arg11[%c17, %c0_94] : memref<19x128xf32, #tpu.memory_space<vmem>>, vector<1x64xf32>
    %255 = vector.broadcast %254 : vector<1x64xf32> to vector<8x64xf32>
    %256 = arith.addf %253, %255 : vector<8x64xf32>
    %cst_95 = arith.constant 0.000000e+00 : f32
    %257 = vector.broadcast %cst_95 : f32 to vector<8x64xf32>
    %258 = arith.maximumf %256, %257 : vector<8x64xf32>
    %259 = arith.truncf %258 : vector<8x64xf32> to vector<8x64xbf16>
    %c0_96 = arith.constant 0 : index
    %c0_97 = arith.constant 0 : index
    %260 = vector.load %arg10[%c0_96, %c0_97] : memref<64x128xbf16, #tpu.memory_space<vmem>>, vector<64x128xbf16>
    %cst_98 = arith.constant dense<0.000000e+00> : vector<8x128xf32>
    %261 = tpu.matmul %259, %260, %cst_98 {dimension_numbers = #tpu.dot_dimension_numbers<[1], [0], [0], [1], [0, 0, 1, 1], [], []>} : vector<8x64xbf16>, vector<64x128xbf16>, vector<8x128xf32> -> vector<8x128xf32>
    %c18 = arith.constant 18 : index
    %c0_99 = arith.constant 0 : index
    %262 = vector.load %arg11[%c18, %c0_99] : memref<19x128xf32, #tpu.memory_space<vmem>>, vector<1x128xf32>
    %263 = vector.broadcast %262 : vector<1x128xf32> to vector<8x128xf32>
    %264 = arith.addf %261, %263 : vector<8x128xf32>
    %c0_100 = arith.constant 0 : index
    %c0_101 = arith.constant 0 : index
    %265 = vector.load %arg12[%c0_100, %c0_101] : memref<8x128xf32, #tpu.memory_space<vmem>>, vector<8x128xf32>
    tpu.vector_store %arg12[%c0_100, %c0_101], %264 {strides = array<i32>} : memref<8x128xf32, #tpu.memory_space<vmem>>, vector<8x128xf32>,
    return
  }
}

</mosaic_0001>

<bundles_post_ra>
// kernel: _forward.1
= control target key start
LH: loop header
LB: loop body
LE: loop exit
PB: predicated region body
PF: predicated region fallthrough
CT: control target
= control target key end

     0   :  { %17 = vsyncpa [#allocation3], 0  ;;  %s2252_s0 = inlined_call_operand.hbm [shape: f32[8,2,32], index: 0, kind: input, shape index: {}]   ;;  %s2253_s1 = inlined_call_operand.hbm [shape: f32[8,2,32], index: 1, kind: input, shape index: {}]   ;;  %s2254_s2 = inlined_call_operand.hbm [shape: f32[8,64], index: 2, kind: input, shape index: {}]   ;;  %s2255_s3 = inlined_call_operand.vmem [shape: f32[8,64], index: 3, kind: input, shape index: {}]   ;;  %s2256_s4 = inlined_call_operand.vmem [shape: bf16[2,32,96], index: 4, kind: input, shape index: {}]   ;;  %s2257_s5 = inlined_call_operand.vmem [shape: bf16[2,32,32], index: 5, kind: input, shape index: {}]   ;;  %s2258_s6 = inlined_call_operand.vmem [shape: bf16[2,32,64], index: 6, kind: input, shape index: {}]   ;;  %s2259_s7 = inlined_call_operand.vmem [shape: bf16[2,64,32], index: 7, kind: input, shape index: {}]   ;;  %s2260_s8 = inlined_call_operand.vmem [shape: bf16[96,32], index: 8, kind: input, shape index: {}]   ;;  %s2261_s9 = inlined_call_operand.vmem [shape: bf16[64,64], index: 9, kind: input, shape index: {}]   ;;  %s2262_s10 = inlined_call_operand.hbm [shape: bf16[64,128], index: 10, kind: input, shape index: {}]   ;;  %s2263_s11 = inlined_call_operand.hbm [shape: f32[19,128], index: 11, kind: input, shape index: {}]   ;;  %s2264_s12 = inlined_call_operand.vmem [shape: f32[8,128], index: 12, kind: output, shape index: {}]  }
   0x1   :  { %18 = vsyncpa [#allocation5], 0 }
   0x2   :  { %19 = vsyncpa [#allocation8], 0  ;;  %s37_s23 = sshll.u32 %s2253_s1, 4  ;;  %s1882_s24 = smov [#allocation4]   ;;  %s38_s23 = int_to_ptr.hbm [resolvable:$true] %s37_s23 }
   0x3   :  { %s39_s25 = sshll.u32 %s1882_s24, 4  ;;  %s75_s28 = sshll.u32 %s2262_s10, 4  ;;  %s40_s25 = int_to_ptr.vmem [resolvable:$true] %s39_s25  ;;  %s76_s28 = int_to_ptr.hbm [resolvable:$true] %s75_s28 }
   0x4   :  { %s1883_s29 = smov 32   ;;  %s1884_s30 = smov 2  }
   0x5   :  { %45 = dma.hbm_to_vmem [thread:$0]  %s38_s23, 256, %s40_s25, [#allocation5], %s1883_s29, %s1883_s29, %s1884_s30  }
   0x6   :  { %s1885_s13 = smov [#allocation7]   ;;  %s1886_s15 = smov 64  }
   0x7   :  { %s77_s14 = sshll.u32 %s1885_s13, 4  ;;  %s1887_s16 = smov 4   ;;  %s78_s14 = int_to_ptr.vmem [resolvable:$true] %s77_s14 }
   0x8   :  { %83 = dma.hbm_to_vmem [thread:$0]  %s76_s28, 512, %s78_s14, [#allocation8], %s1886_s15, %s1886_s15, %s1887_s16  }
   0x9   :  { %s24_s18 = sshll.u32 %s2252_s0, 4  ;;  %s1888_s10 = smov [#allocation2]   ;;  %s25_s18 = int_to_ptr.hbm [resolvable:$true] %s24_s18 }
   0xa   :  { %s26_s19 = sshll.u32 %s1888_s10, 4  ;;  %s51_s22 = sshll.u32 %s2254_s2, 4  ;;  %s27_s19 = int_to_ptr.vmem [resolvable:$true] %s26_s19  ;;  %s52_s22 = int_to_ptr.hbm [resolvable:$true] %s51_s22 }
   0xb   :  { %32 = dma.hbm_to_vmem [thread:$0]  %s25_s18, 256, %s27_s19, [#allocation3], %s1883_s29, %s1883_s29, %s1884_s30  }
   0xc   :  { %s1889_s23 = smov [#allocation6]   ;;  %s88_s27 = sshll.u32 %s2263_s11, 4  ;;  %s89_s27 = int_to_ptr.hbm [resolvable:$true] %s88_s27 }
   0xd   :  { %s53_s24 = sshll.u32 %s1889_s23, 4  ;;  %s1890_s0 = smov [#allocation9]   ;;  %s54_s24 = int_to_ptr.vmem [resolvable:$true] %s53_s24 }
   0xe   :  { %56 = dma.hbm_to_vmem [thread:$0]  %s52_s22, 128, %s54_s24, [#allocation5]  }
   0xf   :  { %s90_s28 = sshll.u32 %s1890_s0, 4  ;;  %s1891_s13 = smov 128   ;;  %s91_s28 = int_to_ptr.vmem [resolvable:$true] %s90_s28 }
  0x10   :  { %s1892_s14 = smov 8  }
  0x11   :  { %96 = dma.hbm_to_vmem [thread:$0]  %s89_s27, 384, %s91_s28, [#allocation8], %s1891_s13, %s1891_s13, %s1892_s14  }
  0x12   :  { %1876 = dma.done.wait [#allocation3], 256  }
  0x13   :  { %1877 = vsyncadd [#allocation3], 4294967040 }
  0x14   :  { %1878 = dma.done.wait [#allocation5], 384  }
  0x15   :  { %1879 = vsyncadd [#allocation5], 4294966912 }
  0x16   :  { %1880 = dma.done.wait [#allocation8], 896  }
  0x17   :  { %1881 = vsyncadd [#allocation8], 4294966400  ;;  %v1624_v0 = vld [vmem:[%s2256_s4 + $0x8] sm:$0xff]  ;;  %vm143_vm0 = vcmask 1041409   ;;  %v1623_v1 = vld [vmem:[%s2256_s4] sm:$0xff]  ;;  %vm146_vm1 = vcmask 1042434  }
  0x18   :  { %vm149_vm2 = vcmask 1043459   ;;  %vm152_vm3 = vcmask 1044484   ;;  %vm155_vm4 = vcmask 1045509   ;;  %218 = vmatpush.bf16.msra.mxu3 %v1624_v0  ;;  %v119_v2 = vld [vmem:[#allocation2 + $0x3] sm:$0x1]  ;;  %vm158_vm5 = vcmask 1046534  }
  0x19   :  { %v120_v3 = vld [vmem:[#allocation2 + $0x5] sm:$0x1]  ;;  %v121_v4 = vld [vmem:[#allocation2 + $0x7] sm:$0x1]  ;;  %v118_v5 = vld [vmem:[#allocation2 + $0x1] sm:$0x1] }
  0x1a   :  { %v122_v6 = vld [vmem:[#allocation2 + $0x9] sm:$0x1]  ;;  %v123_v7 = vld [vmem:[#allocation2 + $0xb] sm:$0x1]  ;;  %v124_v8 = vld [vmem:[#allocation2 + $0xd] sm:$0x1] }
  0x1b   :  { %v125_v9 = vld [vmem:[#allocation2 + $0xf] sm:$0x1]  ;;  %v126_v10 = vld [vmem:[#allocation4 + $0x1] sm:$0x1]  ;;  %v127_v11 = vld [vmem:[#allocation4 + $0x3] sm:$0x1] }
  0x1c   :  { %v128_v12 = vld [vmem:[#allocation4 + $0x5] sm:$0x1]  ;;  %v129_v13 = vld [vmem:[#allocation4 + $0x7] sm:$0x1]  ;;  %v130_v14 = vld [vmem:[#allocation4 + $0x9] sm:$0x1]  ;;  %219 = vmatpush.bf16.msra.mxu3 %v1623_v1 }
  0x1d   :  { %v131_v15 = vld [vmem:[#allocation4 + $0xb] sm:$0x1]  ;;  %v132_v16 = vld [vmem:[#allocation4 + $0xd] sm:$0x1]  ;;  %v142_v17 = vrot.slane %v119_v2, 7  ;;  %v145_v18 = vrot.slane %v120_v3, 6 }
  0x1e   :  { %v148_v19 = vrot.slane %v121_v4, 5  ;;  %vm161_vm6 = vcmask 1047559   ;;  %v133_v20 = vld [vmem:[#allocation4 + $0xf] sm:$0x1]  ;;  %v151_v21 = vrot.slane %v122_v6, 4  ;;  %v154_v22 = vrot.slane %v123_v7, 3 }
  0x1f   :  { %v157_v23 = vrot.slane %v124_v8, 2  ;;  %v172_v24 = vrot.slane %v127_v11, 7  ;;  %v144_v25 = vsel %vm143_vm0, %v142_v17, %v118_v5  ;;  %v174_v26 = vrot.slane %v128_v12, 6  ;;  %v1687_v47 = vld [vmem:[#allocation9] ss:$0 sm:$0xff]  ;;  %s1893_s1 = smov 112  }
  0x20   :  { %v176_v27 = vrot.slane %v129_v13, 5  ;;  %v178_v28 = vrot.slane %v130_v14, 4  ;;  %v147_v29 = vsel %vm146_vm1, %v145_v18, %v144_v25  ;;  %v160_v30 = vrot.slane %v125_v9, 1  ;;  %s1894_s17 = smov 96   ;;  %s1895_s19 = smov 16  }
  0x21   :  { %v173_v31 = vsel %vm143_vm0, %v172_v24, %v126_v10  ;;  %v180_v32 = vrot.slane %v131_v15, 3  ;;  %v150_v33 = vsel %vm149_vm2, %v148_v19, %v147_v29  ;;  %v182_v35 = vrot.slane %v132_v16, 2 }
  0x22   :  { %v175_v34 = vsel %vm146_vm1, %v174_v26, %v173_v31  ;;  %v184_v36 = vrot.slane %v133_v20, 1  ;;  %v153_v37 = vsel %vm152_vm3, %v151_v21, %v150_v33  ;;  %vm208_vm7 = vcmask 261120  }
  0x23   :  { %v177_v38 = vsel %vm149_vm2, %v176_v27, %v175_v34  ;;  %v156_v39 = vsel %vm155_vm4, %v154_v22, %v153_v37  ;;  %vm243_vm8 = vcmask 130048   ;;  %vm335_vm9 = vcmask 64512  }
  0x24   :  { %v179_v40 = vsel %vm152_vm3, %v178_v28, %v177_v38  ;;  %v159_v41 = vsel %vm158_vm5, %v157_v23, %v156_v39  ;;  %vm389_vm10 = vcmask 1043456   ;;  %vm649_vm2 = vcmask 523264  }
  0x25   :  { %v181_v42 = vsel %vm155_vm4, %v180_v32, %v179_v40  ;;  %v2001_v43 = vsel %vm161_vm6, %v160_v30, %v159_v41 }
  0x26   :  { %v183_v44 = vsel %vm158_vm5, %v182_v35, %v181_v42 }
  0x27   :  { %v2005_v45 = vsel %vm161_vm6, %v184_v36, %v183_v44 }
  0x28   :  { %v189_v46 = vpack.c.bf16 %v2005_v45, %v2001_v43 }
  0x2a   :  { %1448 = vmatmul.msk.bf16.vlgmr.msra.gmra.mxu3 %vm208_vm7, %v189_v46 }
  0xad   :  { %v221_v48 = vpop.f32.mrf.mxu3 }
  0xae   :  { %v222_v49 = vadd.f32 %v1687_v47, %v221_v48 }
  0xb0   :  { %228 = vrot.lane.b32.xlu0 %v222_v49, %s1893_s1  ;;  %v234_v54 = vpack.c.bf16 %v222_v49, %v222_v49 }
  0xb2   :  { %v239_v56 = vunpack.c.l.b16 %v234_v54 }
  0xb4   :  { %v2016_v57 = vpack.c.b16 %v239_v56, %v239_v56 }
  0xb5   :  { %v223_v50 = vpop.f32.mrf.mxu3 }
  0xb6   :  { %v224_v51 = vadd.f32 %v1687_v47, %v223_v50 }
  0xb8   :  { %v235_v52 = vpack.c.bf16 %v224_v51, %v224_v51  ;;  %230 = vrot.lane.b32.xlu0 %v224_v51, %s1893_s1 }
  0xba   :  { %v264_v53 = vunpack.c.l.b16 %v235_v52 }
  0xbc   :  { %v2012_v55 = vpack.c.b16 %v264_v53, %v264_v53 }
  0xbe   :  { %266 = vrot.lane.b32.xlu2 %v2012_v55, %s1894_s17 }
  0xc6   :  { %241 = vrot.lane.b32.xlu2 %v2016_v57, %s1894_s17 }
 0x118   :  { %v267_v58 = vpop.permute.xlu2 %266 }
 0x119   :  { %v272_v59 = vsel %vm243_vm8, %v267_v58, 0 }
 0x11a   :  { %281 = vmatpush.bf16.xpose.msra.mxu2 %v272_v59 }
 0x120   :  { %v242_v60 = vpop.permute.xlu2 %241 }
 0x121   :  { %1450 = vmatmul.msk.bf16.vlgmr.msra.gmra.mxu2 %vm243_vm8, %v235_v52  ;;  %v248_v61 = vsel %vm243_vm8, %v242_v60, 0 }
 0x122   :  { %v229_v62 = vpop.permute.xlu0 %228  ;;  %257 = vmatpush.bf16.xpose.msra.mxu1 %v248_v61 }
 0x123   :  { %v236_v63 = vpack.c.bf16 %v229_v62, %v229_v62 }
 0x125   :  { %v288_v0 = vunpack.c.l.b16 %v236_v63 }
 0x127   :  { %v289_v1 = vpack.c.b16 %v288_v0, %v288_v0 }
 0x129   :  { %290 = vrot.lane.b32.xlu1 %v289_v1, %s1894_s17  ;;  %1449 = vmatmul.msk.bf16.vlgmr.msra.gmra.mxu1 %vm243_vm8, %v234_v54 }
 0x12a   :  { %v231_v2 = vpop.permute.xlu0 %230 }
 0x12b   :  { %v237_v3 = vpack.c.bf16 %v231_v2, %v231_v2 }
 0x12d   :  { %v312_v4 = vunpack.c.l.b16 %v237_v3 }
 0x12f   :  { %v313_v5 = vpack.c.b16 %v312_v4, %v312_v4  ;;  %v1626_v4 = vld [vmem:[%s2257_s5 + $0x8] sm:$0xff] }
 0x131   :  { %314 = vrot.lane.b32.xlu1 %v313_v5, %s1894_s17 }
 0x19b   :  { %v291_v6 = vpop.permute.xlu1 %290 }
 0x19c   :  { %v296_v7 = vsel %vm243_vm8, %v291_v6, 0 }
 0x19d   :  { %305 = vmatpush.bf16.xpose.msrb.mxu3 %v296_v7 }
 0x1a3   :  { %v315_v8 = vpop.permute.xlu1 %314 }
 0x1a4   :  { %v283_v9 = vpop.f32.mrf.mxu2  ;;  %1451 = vmatmul.msk.bf16.vlgmr.msrb.gmra.mxu3 %vm243_vm8, %v236_v63  ;;  %v320_v10 = vsel %vm243_vm8, %v315_v8, 0 }
 0x1a5   :  { %329 = vmatpush.bf16.xpose.msra.mxu0 %v320_v10  ;;  %v339_v11 = vsel %vm335_vm9, %v283_v9, -inf }
 0x1a6   :  { %340 = vmax.xlane.f32.xlu2 %v339_v11  ;;  %v259_v12 = vpop.f32.mrf.mxu1 }
 0x1a7   :  { %v336_v14 = vsel %vm335_vm9, %v259_v12, -inf }
 0x1ac   :  { %v285_v13 = vpop.f32.mrf.mxu2  ;;  %1452 = vmatmul.msk.bf16.vlgmr.msra.gmra.mxu0 %vm243_vm8, %v237_v3 }
 0x1ae   :  { %337 = vmax.xlane.f32.xlu2 %v336_v14  ;;  %v261_v15 = vpop.f32.mrf.mxu1  ;;  %v1625_v14 = vld [vmem:[%s2257_s5] sm:$0xff] }
 0x1c6   :  { %427 = vrot.lane.b32.xlu2 %v289_v1, %s1886_s15 }
 0x219   :  { %v341_v16 = vpop.xlane.xlu2 %340 }
 0x21a   :  { %v349_v17 = vsub.f32 %v283_v9, %v341_v16 }
 0x21c   :  { %v354_v19 = vmul.f32 1.442695, %v349_v17 }
 0x21e   :  { %1706 = vpow2.f32 %v354_v19 }
 0x221   :  { %v338_v18 = vpop.xlane.xlu2 %337 }
 0x222   :  { %v348_v22 = vsub.f32 %v259_v12, %v338_v18 }
 0x224   :  { %v352_v27 = vmul.f32 1.442695, %v348_v22  ;;  %v1707_v28 = vpop.eup %1706 }
 0x225   :  { %v363_v31 = vsel %vm335_vm9, %v1707_v28, 0.0 }
 0x226   :  { %1708 = vpow2.f32 %v352_v27 }
 0x227   :  { %v307_v20 = vpop.f32.mrf.mxu3 }
 0x228   :  { %v342_v21 = vsel %vm335_vm9, %v307_v20, -inf }
 0x229   :  { %343 = vmax.xlane.f32.xlu0 %v342_v21  ;;  %v331_v23 = vpop.f32.mrf.mxu0  ;;  %v428_v24 = vpop.permute.xlu2 %427  ;;  %v1688_v21 = vld [vmem:[#allocation9 + $0x1] ss:$0 sm:$0xff] }
 0x22a   :  { %v433_v25 = vsel %vm389_vm10, %v428_v24, 0  ;;  %v345_v26 = vsel %vm335_vm9, %v331_v23, -inf }
 0x22b   :  { %346 = vmax.xlane.f32.xlu1 %v345_v26  ;;  %442 = vmatpush.bf16.msra.mxu3 %v433_v25 }
 0x22c   :  { %v1709_v32 = vpop.eup %1708 }
 0x22d   :  { %v360_v33 = vsel %vm335_vm9, %v1709_v32, 0.0 }
 0x22f   :  { %v309_v29 = vpop.f32.mrf.mxu3 }
 0x231   :  { %v333_v30 = vpop.f32.mrf.mxu0 }
 0x232   :  { %v1896_v30 = vmov 32.0  }
 0x233   :  { %364 = vadd.xlane.f32.xlu1 %v363_v31 }
 0x23b   :  { %361 = vadd.xlane.f32.xlu1 %v360_v33 }
 0x29c   :  { %v344_v34 = vpop.xlane.xlu0 %343 }
 0x29d   :  { %v350_v35 = vsub.f32 %v307_v20, %v344_v34 }
 0x29e   :  { %v347_v36 = vpop.xlane.xlu1 %346 }
 0x29f   :  { %v356_v37 = vmul.f32 1.442695, %v350_v35  ;;  %v351_v38 = vsub.f32 %v331_v23, %v347_v36 }
 0x2a1   :  { %1710 = vpow2.f32 %v356_v37  ;;  %v358_v39 = vmul.f32 1.442695, %v351_v38 }
 0x2a3   :  { %1712 = vpow2.f32 %v358_v39 }
 0x2a6   :  { %v365_v46 = vpop.xlane.xlu1 %364 }
 0x2a7   :  { %v1711_v40 = vpop.eup %1710 }
 0x2a8   :  { %v366_v41 = vsel %vm335_vm9, %v1711_v40, 0.0 }
 0x2a9   :  { %v1713_v42 = vpop.eup %1712  ;;  %367 = vadd.xlane.f32.xlu0 %v366_v41 }
 0x2aa   :  { %v369_v44 = vsel %vm335_vm9, %v1713_v42, 0.0 }
 0x2ab   :  { %370 = vadd.xlane.f32.xlu1 %v369_v44 }
 0x2ae   :  { %v362_v47 = vpop.xlane.xlu1 %361 }
 0x2bd   :  { %448 = vrot.lane.b32.xlu0 %v313_v5, %s1886_s15 }
 0x2c4   :  { %406 = vrot.lane.b32.xlu1 %v2012_v55, %s1886_s15 }
 0x2c5   :  { %384 = vrot.lane.b32.xlu0 %v2016_v57, %s1886_s15 }
 0x31c   :  { %v368_v48 = vpop.xlane.xlu0 %367 }
 0x31d   :  { %1714 = vrcp.f32 %v368_v48 }
 0x31e   :  { %v371_v49 = vpop.xlane.xlu1 %370 }
 0x31f   :  { %1716 = vrcp.f32 %v371_v49 }
 0x320   :  { %1718 = vrcp.f32 %v365_v46 }
 0x321   :  { %1720 = vrcp.f32 %v362_v47  ;;  %v1628_v47 = vld [vmem:[%s2258_s6 + $0x8] sm:$0xff] }
 0x322   :  { %1722 = vrcp.f32 %v1896_v30 }
 0x323   :  { %v1715_v50 = vpop.eup %1714 }
 0x324   :  { %v378_v51 = vmul.f32 %v1715_v50, %v1711_v40  ;;  %v1627_v50 = vld [vmem:[%s2258_s6] sm:$0xff] }
 0x325   :  { %v1717_v53 = vpop.eup %1716 }
 0x326   :  { %v382_v52 = vpack.c.bf16 %v378_v51, %v378_v51  ;;  %v379_v54 = vmul.f32 %v1717_v53, %v1713_v42  ;;  %v1719_v57 = vpop.eup %1718 }
 0x327   :  { %v1721_v59 = vpop.eup %1720  ;;  %v377_v60 = vmul.f32 %v1719_v57, %v1707_v28 }
 0x328   :  { %1455 = vmatmul.msk.bf16.vlgmr.msra.gmra.mxu3 %vm335_vm9, %v382_v52  ;;  %v383_v58 = vpack.c.bf16 %v379_v54, %v379_v54  ;;  %v376_v61 = vmul.f32 %v1721_v59, %v1709_v32  ;;  %v1723_v31 = vpop.eup %1722 }
 0x329   :  { %v381_v2 = vpack.c.bf16 %v377_v60, %v377_v60  ;;  %v526_v32 = vmul.f32 32.0, %v1723_v31  ;;  %vm530_vm11 = vweird.f32 %v1723_v31 }
 0x32a   :  { %v380_v3 = vpack.c.bf16 %v376_v61, %v376_v61 }
 0x32b   :  { %v527_v33 = vsub.f32 1.0, %v526_v32 }
 0x32d   :  { %v528_v34 = vmul.f32 %v1723_v31, %v527_v33 }
 0x32f   :  { %v449_v56 = vpop.permute.xlu0 %448  ;;  %v529_v35 = vadd.f32 %v1723_v31, %v528_v34 }
 0x330   :  { %v454_v55 = vsel %vm389_vm10, %v449_v56, 0 }
 0x331   :  { %463 = vmatpush.bf16.msrb.mxu0 %v454_v55  ;;  %v2066_v36 = vsel %vm530_vm11, %v1723_v31, %v529_v35 }
 0x334   :  { %1456 = vmatmul.msk.bf16.vlgmr.msrb.gmra.mxu0 %vm335_vm9, %v383_v58 }
 0x336   :  { %v407_v62 = vpop.permute.xlu1 %406 }
 0x337   :  { %v385_v63 = vpop.permute.xlu0 %384  ;;  %v412_v0 = vsel %vm389_vm10, %v407_v62, 0 }
 0x338   :  { %421 = vmatpush.bf16.msrb.mxu2 %v412_v0  ;;  %v391_v1 = vsel %vm389_vm10, %v385_v63, 0 }
 0x339   :  { %400 = vmatpush.bf16.msrb.mxu1 %v391_v1 }
 0x33b   :  { %1454 = vmatmul.msk.bf16.vlgmr.msrb.gmra.mxu2 %vm335_vm9, %v381_v2 }
 0x33c   :  { %1453 = vmatmul.msk.bf16.vlgmr.msrb.gmra.mxu1 %vm335_vm9, %v380_v3  ;;  %604 = vmatpush.bf16.msra.mxu2 %v1628_v47  ;;  %v1689_v3 = vld [vmem:[#allocation9 + $0x2] ss:$0 sm:$0xff] }
 0x33d   :  { %507 = vmatpush.bf16.msra.mxu1 %v1626_v4 }
 0x340   :  { %605 = vmatpush.bf16.msra.mxu2 %v1627_v50 }
 0x341   :  { %508 = vmatpush.bf16.msra.mxu1 %v1625_v14  ;;  %v1632_v14 = vld [vmem:[%s2259_s7 + $0x18] sm:$0xff] }
 0x342   :  { %657 = vmatpush.bf16.msrb.mxu3 %v1632_v14 }
 0x3ab   :  { %v444_v5 = vpop.f32.mrf.mxu3 }
 0x3b1   :  { %v465_v6 = vpop.f32.mrf.mxu0 }
 0x3b2   :  { %v1672_v7 = vpack.i.bf16 %v465_v6, %v444_v5 }
 0x3b3   :  { %v446_v8 = vpop.f32.mrf.mxu3 }
 0x3b4   :  { %1673 = vrot.lane.b32.xlu2 %v1672_v7, %s1895_s19  ;;  %v1690_v7 = vld [vmem:[#allocation9 + $0x3] ss:$0 sm:$0xff] }
 0x3b9   :  { %v402_v9 = vpop.f32.mrf.mxu1  ;;  %v467_v10 = vpop.f32.mrf.mxu0 }
 0x3be   :  { %v423_v11 = vpop.f32.mrf.mxu2 }
 0x3c1   :  { %v404_v12 = vpop.f32.mrf.mxu1 }
 0x3c6   :  { %v425_v13 = vpop.f32.mrf.mxu2 }
 0x40e   :  { %v1674_v15 = vpop.permute.xlu2 %1673 }
 0x40f   :  { %v1676_v16 = vunpack.i.h.bf16 %v1674_v15  ;;  %v1675_v17 = vunpack.i.l.bf16 %v1674_v15  ;;  %v1631_v15 = vld [vmem:[%s2259_s7 + $0x10] sm:$0xff] }
 0x410   :  { %658 = vmatpush.bf16.msrb.mxu3 %v1631_v15 }
 0x411   :  { %v478_v18 = vsel %vm243_vm8, %v423_v11, %v1676_v16  ;;  %v477_v19 = vsel %vm243_vm8, %v402_v9, %v1675_v17  ;;  %v1630_v16 = vld [vmem:[%s2259_s7 + $0x8] sm:$0xff]  ;;  %v1629_v17 = vld [vmem:[%s2259_s7] sm:$0xff] }
 0x412   :  { %v479_v20 = vpack.c.bf16 %v478_v18, %v477_v19  ;;  %v1691_v19 = vld [vmem:[#allocation9 + $0x4] ss:$0 sm:$0xff] }
 0x414   :  { %1465 = vmatmul.msk.bf16.vlgmr.msra.gmra.mxu1 %vm208_vm7, %v479_v20  ;;  %659 = vmatpush.bf16.msrb.mxu3 %v1630_v16 }
 0x418   :  { %660 = vmatpush.bf16.msrb.mxu3 %v1629_v17 }
 0x491   :  { %v510_v22 = vpop.f32.mrf.mxu1 }
 0x492   :  { %v511_v23 = vadd.f32 %v1688_v21, %v510_v22 }
 0x494   :  { %v515_v24 = vadd.f32 %v511_v23, %v2001_v43 }
 0x496   :  { %v519_v25 = vsel %vm208_vm7, %v515_v24, 0.0 }
 0x497   :  { %520 = vadd.xlane.f32.xlu0 %v519_v25 }
 0x499   :  { %v512_v26 = vpop.f32.mrf.mxu1 }
 0x49a   :  { %v513_v27 = vadd.f32 %v1688_v21, %v512_v26  ;;  %v1692_v26 = vld [vmem:[#allocation9 + $0x5] ss:$0 sm:$0xff] }
 0x49c   :  { %v516_v28 = vadd.f32 %v513_v27, %v2005_v45 }
 0x49e   :  { %v522_v29 = vsel %vm208_vm7, %v516_v28, 0.0 }
 0x49f   :  { %523 = vadd.xlane.f32.xlu2 %v522_v29 }
 0x50a   :  { %v521_v43 = vpop.xlane.xlu0 %520 }
 0x50b   :  { %v532_v37 = vmul.f32 %v2066_v36, %v521_v43 }
 0x50d   :  { %v534_v38 = vsub.f32 %v515_v24, %v532_v37 }
 0x50f   :  { %v536_v39 = vmul.f32 %v534_v38, %v534_v38 }
 0x511   :  { %v538_v45 = vsel %vm208_vm7, %v536_v39, 0.0 }
 0x512   :  { %v524_v40 = vpop.xlane.xlu2 %523  ;;  %539 = vadd.xlane.f32.xlu1 %v538_v45 }
 0x513   :  { %v533_v41 = vmul.f32 %v2066_v36, %v524_v40 }
 0x515   :  { %v535_v42 = vsub.f32 %v516_v28, %v533_v41 }
 0x517   :  { %v537_v44 = vmul.f32 %v535_v42, %v535_v42 }
 0x519   :  { %v541_v46 = vsel %vm208_vm7, %v537_v44, 0.0 }
 0x51a   :  { %542 = vadd.xlane.f32.xlu0 %v541_v46  ;;  %v1634_v46 = vld [vmem:[%s2256_s4 + $0x18] sm:$0xff] }
 0x51b   :  { %750 = vmatpush.bf16.msra.mxu0 %v1634_v46 }
 0x585   :  { %v540_v48 = vpop.xlane.xlu1 %539 }
 0x586   :  { %v544_v49 = vmul.f32 %v540_v48, %v2066_v36 }
 0x588   :  { %v546_v51 = vadd.f32 1e-05, %v544_v49  ;;  %v1633_v49 = vld [vmem:[%s2256_s4 + $0x10] sm:$0xff] }
 0x589   :  { %751 = vmatpush.bf16.msra.mxu0 %v1633_v49 }
 0x58a   :  { %1724 = vrsqrt.f32 %v546_v51  ;;  %vm554_vm13 = vweird.f32 %v546_v51 }
 0x58d   :  { %v543_v52 = vpop.xlane.xlu0 %542 }
 0x58e   :  { %v545_v53 = vmul.f32 %v543_v52, %v2066_v36 }
 0x590   :  { %v1725_v54 = vpop.eup %1724  ;;  %v547_v56 = vadd.f32 1e-05, %v545_v53 }
 0x591   :  { %v549_v55 = vmul.f32 %v1725_v54, %v546_v51  ;;  %vm555_vm12 = vweird.f32 %v1725_v54 }
 0x592   :  { %1726 = vrsqrt.f32 %v547_v56  ;;  %vm556_vm14 = vmor %vm554_vm13, %vm555_vm12  ;;  %vm564_vm0 = vweird.f32 %v547_v56 }
 0x593   :  { %v550_v57 = vmul.f32 %v1725_v54, %v549_v55 }
 0x595   :  { %v551_v58 = vmul.f32 0.5, %v550_v57 }
 0x597   :  { %v552_v59 = vsub.f32 1.5, %v551_v58 }
 0x598   :  { %v1727_v60 = vpop.eup %1726 }
 0x599   :  { %v553_v61 = vmul.f32 %v1725_v54, %v552_v59  ;;  %v559_v62 = vmul.f32 %v1727_v60, %v547_v56  ;;  %vm565_vm15 = vweird.f32 %v1727_v60 }
 0x59a   :  { %vm566_vm1 = vmor %vm564_vm0, %vm565_vm15 }
 0x59b   :  { %v560_v63 = vmul.f32 %v1727_v60, %v559_v62  ;;  %v557_v0 = vsel %vm556_vm14, %v1725_v54, %v553_v61 }
 0x59c   :  { %v568_v4 = vmul.f32 %v557_v0, %v534_v38 }
 0x59d   :  { %v561_v1 = vmul.f32 0.5, %v560_v63 }
 0x59e   :  { %v571_v8 = vmul.f32 %v1689_v3, %v568_v4 }
 0x59f   :  { %v562_v2 = vsub.f32 1.5, %v561_v1 }
 0x5a0   :  { %v574_v11 = vadd.f32 %v1690_v7, %v571_v8 }
 0x5a1   :  { %v563_v5 = vmul.f32 %v1727_v60, %v562_v2  ;;  %v1693_v2 = vld [vmem:[#allocation9 + $0x6] ss:$0 sm:$0xff] }
 0x5a3   :  { %v567_v6 = vsel %vm566_vm1, %v1727_v60, %v563_v5 }
 0x5a4   :  { %v569_v9 = vmul.f32 %v567_v6, %v535_v42  ;;  %v1694_v6 = vld [vmem:[#allocation9 + $0x7] ss:$0 sm:$0xff] }
 0x5a6   :  { %v572_v10 = vmul.f32 %v1689_v3, %v569_v9 }
 0x5a8   :  { %v575_v12 = vadd.f32 %v1690_v7, %v572_v10 }
 0x5aa   :  { %v576_v13 = vpack.c.bf16 %v575_v12, %v574_v11 }
 0x5ac   :  { %1474 = vmatmul.msk.bf16.vlgmr.msra.gmra.mxu2 %vm208_vm7, %v576_v13  ;;  %v1695_v13 = vld [vmem:[#allocation9 + $0x8] ss:$0 sm:$0xff] }
 0x62f   :  { %v607_v18 = vpop.f32.mrf.mxu2 }
 0x630   :  { %v608_v20 = vadd.f32 %v1691_v19, %v607_v18 }
 0x632   :  { %v612_v23 = vmax.f32 %v608_v20, 0.0 }
 0x637   :  { %v609_v21 = vpop.f32.mrf.mxu2 }
 0x638   :  { %v610_v22 = vadd.f32 %v1691_v19, %v609_v21 }
 0x63a   :  { %v613_v24 = vmax.f32 %v610_v22, 0.0 }
 0x63c   :  { %v614_v25 = vpack.c.bf16 %v613_v24, %v612_v23 }
 0x63e   :  { %1491 = vmatmul.msk.bf16.vlgmr.msrb.gmra.mxu3 %vm649_vm2, %v614_v25 }
 0x6c1   :  { %v662_v27 = vpop.f32.mrf.mxu3 }
 0x6c2   :  { %v663_v28 = vadd.f32 %v1692_v26, %v662_v27 }
 0x6c4   :  { %v667_v29 = vadd.f32 %v663_v28, %v574_v11 }
 0x6c6   :  { %v671_v30 = vsel %vm208_vm7, %v667_v29, 0.0 }
 0x6c7   :  { %672 = vadd.xlane.f32.xlu2 %v671_v30 }
 0x6c9   :  { %v664_v31 = vpop.f32.mrf.mxu3 }
 0x6ca   :  { %v665_v32 = vadd.f32 %v1692_v26, %v664_v31 }
 0x6cc   :  { %v668_v33 = vadd.f32 %v665_v32, %v575_v12 }
 0x6ce   :  { %v674_v34 = vsel %vm208_vm7, %v668_v33, 0.0 }
 0x6cf   :  { %675 = vadd.xlane.f32.xlu0 %v674_v34 }
 0x73a   :  { %v673_v35 = vpop.xlane.xlu2 %672 }
 0x73b   :  { %v677_v43 = vmul.f32 %v673_v35, %v2066_v36 }
 0x73d   :  { %v679_v37 = vsub.f32 %v667_v29, %v677_v43 }
 0x73f   :  { %v681_v38 = vmul.f32 %v679_v37, %v679_v37 }
 0x741   :  { %v683_v39 = vsel %vm208_vm7, %v681_v38, 0.0 }
 0x742   :  { %v676_v45 = vpop.xlane.xlu0 %675  ;;  %684 = vadd.xlane.f32.xlu2 %v683_v39 }
 0x743   :  { %v678_v40 = vmul.f32 %v676_v45, %v2066_v36 }
 0x745   :  { %v680_v41 = vsub.f32 %v668_v33, %v678_v40 }
 0x747   :  { %v682_v42 = vmul.f32 %v680_v41, %v680_v41 }
 0x749   :  { %v686_v44 = vsel %vm208_vm7, %v682_v42, 0.0 }
 0x74a   :  { %687 = vadd.xlane.f32.xlu1 %v686_v44 }
 0x7b5   :  { %v685_v47 = vpop.xlane.xlu2 %684 }
 0x7b6   :  { %v689_v48 = vmul.f32 %v685_v47, %v2066_v36 }
 0x7b8   :  { %v691_v50 = vadd.f32 1e-05, %v689_v48 }
 0x7ba   :  { %1728 = vrsqrt.f32 %v691_v50  ;;  %vm699_vm4 = vweird.f32 %v691_v50 }
 0x7bd   :  { %v688_v51 = vpop.xlane.xlu1 %687 }
 0x7be   :  { %v690_v52 = vmul.f32 %v688_v51, %v2066_v36 }
 0x7c0   :  { %v1729_v53 = vpop.eup %1728  ;;  %v692_v54 = vadd.f32 1e-05, %v690_v52 }
 0x7c1   :  { %v694_v56 = vmul.f32 %v1729_v53, %v691_v50  ;;  %vm700_vm3 = vweird.f32 %v1729_v53 }
 0x7c2   :  { %1730 = vrsqrt.f32 %v692_v54  ;;  %vm701_vm5 = vmor %vm699_vm4, %vm700_vm3  ;;  %vm709_vm11 = vweird.f32 %v692_v54 }
 0x7c3   :  { %v695_v55 = vmul.f32 %v1729_v53, %v694_v56 }
 0x7c5   :  { %v696_v57 = vmul.f32 0.5, %v695_v55 }
 0x7c7   :  { %v697_v58 = vsub.f32 1.5, %v696_v57 }
 0x7c8   :  { %v1731_v59 = vpop.eup %1730 }
 0x7c9   :  { %v698_v60 = vmul.f32 %v1729_v53, %v697_v58  ;;  %v704_v61 = vmul.f32 %v1731_v59, %v692_v54  ;;  %vm710_vm6 = vweird.f32 %v1731_v59 }
 0x7ca   :  { %vm711_vm12 = vmor %vm709_vm11, %vm710_vm6  ;;  %vm1306_vm11 = vcmask 785408  }
 0x7cb   :  { %v705_v62 = vmul.f32 %v1731_v59, %v704_v61  ;;  %v702_v63 = vsel %vm701_vm5, %v1729_v53, %v698_v60 }
 0x7cc   :  { %v713_v3 = vmul.f32 %v702_v63, %v679_v37 }
 0x7cd   :  { %v706_v0 = vmul.f32 0.5, %v705_v62 }
 0x7ce   :  { %v716_v7 = vmul.f32 %v1693_v2, %v713_v3 }
 0x7cf   :  { %v707_v1 = vsub.f32 1.5, %v706_v0 }
 0x7d0   :  { %v2108_v10 = vadd.f32 %v1694_v6, %v716_v7 }
 0x7d1   :  { %v708_v4 = vmul.f32 %v1731_v59, %v707_v1 }
 0x7d3   :  { %v712_v5 = vsel %vm711_vm12, %v1731_v59, %v708_v4 }
 0x7d4   :  { %v714_v8 = vmul.f32 %v712_v5, %v680_v41 }
 0x7d6   :  { %v717_v9 = vmul.f32 %v1693_v2, %v714_v8 }
 0x7d8   :  { %v2110_v11 = vadd.f32 %v1694_v6, %v717_v9 }
 0x7da   :  { %v721_v12 = vpack.c.bf16 %v2110_v11, %v2108_v10 }
 0x7dc   :  { %1504 = vmatmul.msk.bf16.vlgmr.msra.gmra.mxu0 %vm208_vm7, %v721_v12 }
 0x859   :  { %v753_v14 = vpop.f32.mrf.mxu0 }
 0x85a   :  { %v754_v15 = vadd.f32 %v1695_v13, %v753_v14 }
 0x85c   :  { %760 = vrot.lane.b32.xlu0 %v754_v15, %s1893_s1  ;;  %v766_v24 = vpack.c.bf16 %v754_v15, %v754_v15 }
 0x85e   :  { %v771_v28 = vunpack.c.l.b16 %v766_v24 }
 0x860   :  { %v772_v29 = vpack.c.b16 %v771_v28, %v771_v28 }
 0x861   :  { %v755_v16 = vpop.f32.mrf.mxu0 }
 0x862   :  { %v756_v17 = vadd.f32 %v1695_v13, %v755_v16 }
 0x864   :  { %v767_v18 = vpack.c.bf16 %v756_v17, %v756_v17  ;;  %762 = vrot.lane.b32.xlu2 %v756_v17, %s1893_s1 }
 0x866   :  { %v795_v19 = vunpack.c.l.b16 %v767_v18 }
 0x868   :  { %v2117_v20 = vpack.c.b16 %v795_v19, %v795_v19 }
 0x86c   :  { %797 = vrot.lane.b32.xlu2 %v2117_v20, %s1894_s17 }
 0x8be   :  { %v763_v21 = vpop.permute.xlu2 %762 }
 0x8bf   :  { %v769_v22 = vpack.c.bf16 %v763_v21, %v763_v21 }
 0x8c1   :  { %v843_v23 = vunpack.c.l.b16 %v769_v22 }
 0x8c3   :  { %v2121_v25 = vpack.c.b16 %v843_v23, %v843_v23 }
 0x8c5   :  { %845 = vrot.lane.b32.xlu0 %v2121_v25, %s1894_s17 }
 0x8c6   :  { %v798_v26 = vpop.permute.xlu2 %797 }
 0x8c7   :  { %v803_v27 = vsel %vm243_vm8, %v798_v26, 0 }
 0x8c8   :  { %812 = vmatpush.bf16.xpose.msrb.mxu2 %v803_v27 }
 0x8cd   :  { %773 = vrot.lane.b32.xlu0 %v772_v29, %s1894_s17 }
 0x8ce   :  { %v761_v30 = vpop.permute.xlu0 %760 }
 0x8cf   :  { %v768_v31 = vpack.c.bf16 %v761_v30, %v761_v30  ;;  %1506 = vmatmul.msk.bf16.vlgmr.msrb.gmra.mxu2 %vm243_vm8, %v767_v18 }
 0x8d1   :  { %v819_v32 = vunpack.c.l.b16 %v768_v31 }
 0x8d3   :  { %v820_v33 = vpack.c.b16 %v819_v32, %v819_v32 }
 0x8d5   :  { %821 = vrot.lane.b32.xlu1 %v820_v33, %s1894_s17 }
 0x937   :  { %v846_v34 = vpop.permute.xlu0 %845 }
 0x938   :  { %v851_v35 = vsel %vm243_vm8, %v846_v34, 0 }
 0x939   :  { %860 = vmatpush.bf16.xpose.msrb.mxu0 %v851_v35 }
 0x93f   :  { %v774_v43 = vpop.permute.xlu0 %773 }
 0x940   :  { %v779_v37 = vsel %vm243_vm8, %v774_v43, 0  ;;  %1508 = vmatmul.msk.bf16.vlgmr.msrb.gmra.mxu0 %vm243_vm8, %v769_v22 }
 0x941   :  { %788 = vmatpush.bf16.xpose.msrb.mxu1 %v779_v37  ;;  %v1636_v37 = vld [vmem:[%s2257_s5 + $0x18] sm:$0xff] }
 0x947   :  { %v822_v38 = vpop.permute.xlu1 %821 }
 0x948   :  { %v827_v39 = vsel %vm243_vm8, %v822_v38, 0  ;;  %1505 = vmatmul.msk.bf16.vlgmr.msrb.gmra.mxu1 %vm243_vm8, %v766_v24 }
 0x949   :  { %836 = vmatpush.bf16.xpose.msra.mxu3 %v827_v39 }
 0x950   :  { %1507 = vmatmul.msk.bf16.vlgmr.msra.gmra.mxu3 %vm243_vm8, %v768_v31 }
 0x952   :  { %v814_v45 = vpop.f32.mrf.mxu2 }
 0x953   :  { %v869_v40 = vsel %vm335_vm9, %v814_v45, -inf }
 0x954   :  { %870 = vmax.xlane.f32.xlu0 %v869_v40 }
 0x95a   :  { %v816_v41 = vpop.f32.mrf.mxu2 }
 0x9bd   :  { %v862_v42 = vpop.f32.mrf.mxu0 }
 0x9be   :  { %v875_v44 = vsel %vm335_vm9, %v862_v42, -inf }
 0x9bf   :  { %876 = vmax.xlane.f32.xlu2 %v875_v44 }
 0x9c5   :  { %v790_v46 = vpop.f32.mrf.mxu1  ;;  %v864_v47 = vpop.f32.mrf.mxu0 }
 0x9c6   :  { %v866_v57 = vsel %vm335_vm9, %v790_v46, -inf }
 0x9c7   :  { %v871_v48 = vpop.xlane.xlu0 %870 }
 0x9c8   :  { %v879_v49 = vsub.f32 %v814_v45, %v871_v48 }
 0x9ca   :  { %v884_v50 = vmul.f32 1.442695, %v879_v49 }
 0x9cc   :  { %1732 = vpow2.f32 %v884_v50 }
 0x9cd   :  { %v792_v51 = vpop.f32.mrf.mxu1 }
 0x9d2   :  { %v2137_v52 = vpop.eup %1732 }
 0x9d3   :  { %v838_v53 = vpop.f32.mrf.mxu3  ;;  %v893_v54 = vsel %vm335_vm9, %v2137_v52, 0.0 }
 0x9d4   :  { %894 = vadd.xlane.f32.xlu0 %v893_v54  ;;  %v872_v56 = vsel %vm335_vm9, %v838_v53, -inf }
 0x9d5   :  { %873 = vmax.xlane.f32.xlu1 %v872_v56 }
 0x9db   :  { %v840_v55 = vpop.f32.mrf.mxu3 }
 0x9dd   :  { %867 = vmax.xlane.f32.xlu1 %v866_v57 }
 0x9f6   :  { %956 = vrot.lane.b32.xlu1 %v820_v33, %s1886_s15 }
 0x9fe   :  { %914 = vrot.lane.b32.xlu1 %v772_v29, %s1886_s15 }
 0xa32   :  { %v877_v61 = vpop.xlane.xlu2 %876 }
 0xa33   :  { %v881_v1 = vsub.f32 %v862_v42, %v877_v61 }
 0xa35   :  { %v888_v4 = vmul.f32 1.442695, %v881_v1 }
 0xa47   :  { %v895_v15 = vpop.xlane.xlu0 %894 }
 0xa48   :  { %v874_v58 = vpop.xlane.xlu1 %873 }
 0xa49   :  { %v880_v59 = vsub.f32 %v838_v53, %v874_v58  ;;  %v1696_v53 = vld [vmem:[#allocation9 + $0x9] ss:$0 sm:$0xff] }
 0xa4b   :  { %v886_v60 = vmul.f32 1.442695, %v880_v59 }
 0xa4d   :  { %1734 = vpow2.f32 %v886_v60 }
 0xa50   :  { %v868_v62 = vpop.xlane.xlu1 %867 }
 0xa51   :  { %v878_v63 = vsub.f32 %v790_v46, %v868_v62  ;;  %v1635_v46 = vld [vmem:[%s2257_s5 + $0x10] sm:$0xff] }
 0xa53   :  { %v1735_v0 = vpop.eup %1734  ;;  %v882_v2 = vmul.f32 1.442695, %v878_v63 }
 0xa54   :  { %v896_v3 = vsel %vm335_vm9, %v1735_v0, 0.0 }
 0xa55   :  { %1736 = vpow2.f32 %v882_v2  ;;  %897 = vadd.xlane.f32.xlu2 %v896_v3 }
 0xa56   :  { %1738 = vpow2.f32 %v888_v4 }
 0xa5b   :  { %v1737_v5 = vpop.eup %1736 }
 0xa5c   :  { %v890_v6 = vsel %vm335_vm9, %v1737_v5, 0.0  ;;  %v1739_v7 = vpop.eup %1738 }
 0xa5d   :  { %891 = vadd.xlane.f32.xlu0 %v890_v6  ;;  %v899_v8 = vsel %vm335_vm9, %v1739_v7, 0.0 }
 0xa65   :  { %900 = vadd.xlane.f32.xlu0 %v899_v8 }
 0xa68   :  { %v957_v9 = vpop.permute.xlu1 %956 }
 0xa69   :  { %v962_v12 = vsel %vm389_vm10, %v957_v9, 0  ;;  %v1637_v9 = vld [vmem:[%s2258_s6 + $0x10] sm:$0xff] }
 0xa6a   :  { %971 = vmatpush.bf16.msrb.mxu3 %v962_v12 }
 0xa6d   :  { %977 = vrot.lane.b32.xlu2 %v2121_v25, %s1886_s15 }
 0xa70   :  { %v915_v13 = vpop.permute.xlu1 %914 }
 0xa71   :  { %v920_v14 = vsel %vm389_vm10, %v915_v13, 0 }
 0xa72   :  { %929 = vmatpush.bf16.msra.mxu1 %v920_v14 }
 0xa76   :  { %1037 = vmatpush.bf16.msrb.mxu1 %v1636_v37 }
 0xa79   :  { %935 = vrot.lane.b32.xlu0 %v2117_v20, %s1886_s15 }
 0xa7a   :  { %1038 = vmatpush.bf16.msrb.mxu1 %v1635_v46 }
 0xac8   :  { %v898_v16 = vpop.xlane.xlu2 %897 }
 0xac9   :  { %1740 = vrcp.f32 %v898_v16 }
 0xacf   :  { %v1741_v17 = vpop.eup %1740 }
 0xad0   :  { %v908_v18 = vmul.f32 %v1741_v17, %v1735_v0  ;;  %v978_v19 = vpop.permute.xlu2 %977  ;;  %v892_v21 = vpop.xlane.xlu0 %891 }
 0xad1   :  { %v983_v22 = vsel %vm389_vm10, %v978_v19, 0  ;;  %1742 = vrcp.f32 %v892_v21 }
 0xad2   :  { %v912_v23 = vpack.c.bf16 %v908_v18, %v908_v18  ;;  %992 = vmatpush.bf16.msra.mxu0 %v983_v22 }
 0xad4   :  { %1511 = vmatmul.msk.bf16.vlgmr.msrb.gmra.mxu3 %vm335_vm9, %v912_v23 }
 0xad7   :  { %v1743_v24 = vpop.eup %1742 }
 0xad8   :  { %v906_v25 = vmul.f32 %v1743_v24, %v1737_v5  ;;  %v901_v26 = vpop.xlane.xlu0 %900 }
 0xad9   :  { %1744 = vrcp.f32 %v901_v26 }
 0xada   :  { %v910_v27 = vpack.c.bf16 %v906_v25, %v906_v25  ;;  %1746 = vrcp.f32 %v895_v15 }
 0xadc   :  { %1509 = vmatmul.msk.bf16.vlgmr.msra.gmra.mxu1 %vm335_vm9, %v910_v27 }
 0xadf   :  { %v1745_v20 = vpop.eup %1744 }
 0xae0   :  { %v909_v28 = vmul.f32 %v1745_v20, %v1739_v7  ;;  %v1747_v30 = vpop.eup %1746 }
 0xae1   :  { %v907_v31 = vmul.f32 %v1747_v30, %v2137_v52 }
 0xae2   :  { %v913_v29 = vpack.c.bf16 %v909_v28, %v909_v28  ;;  %v1697_v28 = vld [vmem:[#allocation9 + $0xa] ss:$0 sm:$0xff] }
 0xae3   :  { %v911_v34 = vpack.c.bf16 %v907_v31, %v907_v31 }
 0xae4   :  { %1512 = vmatmul.msk.bf16.vlgmr.msra.gmra.mxu0 %vm335_vm9, %v913_v29 }
 0xaeb   :  { %v936_v32 = vpop.permute.xlu0 %935 }
 0xaec   :  { %v941_v33 = vsel %vm389_vm10, %v936_v32, 0  ;;  %v1698_v32 = vld [vmem:[#allocation9 + $0xb] ss:$0 sm:$0xff] }
 0xaed   :  { %950 = vmatpush.bf16.msra.mxu2 %v941_v33 }
 0xaf0   :  { %1510 = vmatmul.msk.bf16.vlgmr.msra.gmra.mxu2 %vm335_vm9, %v911_v34 }
 0xb57   :  { %v973_v35 = vpop.f32.mrf.mxu3 }
 0xb59   :  { %v931_v43 = vpop.f32.mrf.mxu1 }
 0xb5f   :  { %v975_v38 = vpop.f32.mrf.mxu3 }
 0xb61   :  { %v933_v39 = vpop.f32.mrf.mxu1  ;;  %v994_v45 = vpop.f32.mrf.mxu0 }
 0xb62   :  { %v1677_v40 = vpack.i.bf16 %v994_v45, %v973_v35  ;;  %v1642_v39 = vld [vmem:[%s2259_s7 + $0x38] sm:$0xff]  ;;  %v1641_v45 = vld [vmem:[%s2259_s7 + $0x30] sm:$0xff] }
 0xb63   :  { %1181 = vmatpush.bf16.msra.mxu3 %v1642_v39 }
 0xb64   :  { %1678 = vrot.lane.b32.xlu2 %v1677_v40, %s1895_s19  ;;  %v1640_v40 = vld [vmem:[%s2259_s7 + $0x28] sm:$0xff] }
 0xb67   :  { %1182 = vmatpush.bf16.msra.mxu3 %v1641_v45 }
 0xb69   :  { %v996_v41 = vpop.f32.mrf.mxu0 }
 0xb6a   :  { %v1639_v41 = vld [vmem:[%s2259_s7 + $0x20] sm:$0xff] }
 0xb6b   :  { %1183 = vmatpush.bf16.msra.mxu3 %v1640_v40 }
 0xb6f   :  { %1184 = vmatpush.bf16.msra.mxu3 %v1639_v41 }
 0xb73   :  { %v952_v42 = vpop.f32.mrf.mxu2 }
 0xb7b   :  { %v954_v44 = vpop.f32.mrf.mxu2 }
 0xb7c   :  { %v1699_v44 = vld [vmem:[#allocation9 + $0xc] ss:$0 sm:$0xff] }
 0xbbe   :  { %v1679_v47 = vpop.permute.xlu2 %1678 }
 0xbbf   :  { %v1681_v48 = vunpack.i.h.bf16 %v1679_v47  ;;  %v1680_v49 = vunpack.i.l.bf16 %v1679_v47 }
 0xbc1   :  { %v1006_v50 = vsel %vm243_vm8, %v931_v43, %v1680_v49  ;;  %v1007_v51 = vsel %vm243_vm8, %v952_v42, %v1681_v48 }
 0xbc2   :  { %v1008_v52 = vpack.c.bf16 %v1007_v51, %v1006_v50 }
 0xbc4   :  { %1525 = vmatmul.msk.bf16.vlgmr.msrb.gmra.mxu1 %vm208_vm7, %v1008_v52  ;;  %v1700_v52 = vld [vmem:[#allocation9 + $0xd] ss:$0 sm:$0xff] }
 0xc41   :  { %v1040_v54 = vpop.f32.mrf.mxu1 }
 0xc42   :  { %v1041_v56 = vadd.f32 %v1696_v53, %v1040_v54 }
 0xc44   :  { %v1045_v55 = vadd.f32 %v1041_v56, %v2108_v10 }
 0xc46   :  { %v1049_v57 = vsel %vm208_vm7, %v1045_v55, 0.0 }
 0xc47   :  { %1050 = vadd.xlane.f32.xlu1 %v1049_v57 }
 0xc49   :  { %v1042_v58 = vpop.f32.mrf.mxu1 }
 0xc4a   :  { %v1043_v59 = vadd.f32 %v1696_v53, %v1042_v58 }
 0xc4c   :  { %v1046_v60 = vadd.f32 %v1043_v59, %v2110_v11  ;;  %v1638_v11 = vld [vmem:[%s2258_s6 + $0x18] sm:$0xff] }
 0xc4d   :  { %1128 = vmatpush.bf16.msrb.mxu2 %v1638_v11 }
 0xc4e   :  { %v1052_v61 = vsel %vm208_vm7, %v1046_v60, 0.0 }
 0xc4f   :  { %1053 = vadd.xlane.f32.xlu2 %v1052_v61  ;;  %v187_v61 = vld [vmem:[#allocation6] sm:$0xff] }
 0xc51   :  { %1129 = vmatpush.bf16.msrb.mxu2 %v1637_v9  ;;  %v1647_v9 = vld [vmem:[%s2260_s8 + $0x20] sm:$0xff] }
 0xcba   :  { %v1051_v62 = vpop.xlane.xlu1 %1050 }
 0xcbb   :  { %v1055_v63 = vmul.f32 %v1051_v62, %v2066_v36  ;;  %v188_v62 = vld [vmem:[%s2255_s3] sm:$0xff] }
 0xcbd   :  { %v1057_v0 = vsub.f32 %v1045_v55, %v1055_v63  ;;  %v1682_v63 = vpack.i.bf16 %v188_v62, %v187_v61 }
 0xcbf   :  { %v1059_v1 = vmul.f32 %v1057_v0, %v1057_v0 }
 0xcc1   :  { %v1061_v2 = vsel %vm208_vm7, %v1059_v1, 0.0 }
 0xcc2   :  { %v1054_v3 = vpop.xlane.xlu2 %1053  ;;  %1062 = vadd.xlane.f32.xlu0 %v1061_v2 }
 0xcc3   :  { %v1056_v10 = vmul.f32 %v1054_v3, %v2066_v36 }
 0xcc5   :  { %v1058_v4 = vsub.f32 %v1046_v60, %v1056_v10 }
 0xcc7   :  { %v1060_v5 = vmul.f32 %v1058_v4, %v1058_v4 }
 0xcc9   :  { %v1064_v6 = vsel %vm208_vm7, %v1060_v5, 0.0 }
 0xcca   :  { %1065 = vadd.xlane.f32.xlu1 %v1064_v6 }
 0xd35   :  { %v1063_v7 = vpop.xlane.xlu0 %1062 }
 0xd36   :  { %v1067_v8 = vmul.f32 %v1063_v7, %v2066_v36 }
 0xd38   :  { %v1069_v12 = vadd.f32 1e-05, %v1067_v8  ;;  %v1648_v8 = vld [vmem:[%s2260_s8 + $0x28] sm:$0xff] }
 0xd39   :  { %1312 = vmatpush.bf16.msrb.mxu0 %v1648_v8 }
 0xd3a   :  { %1748 = vrsqrt.f32 %v1069_v12  ;;  %vm1077_vm9 = vweird.f32 %v1069_v12 }
 0xd3d   :  { %v1066_v13 = vpop.xlane.xlu1 %1065  ;;  %1313 = vmatpush.bf16.msrb.mxu0 %v1647_v9 }
 0xd3e   :  { %v1068_v14 = vmul.f32 %v1066_v13, %v2066_v36  ;;  %v1645_v13 = vld [vmem:[%s2260_s8 + $0x10] sm:$0xff] }
 0xd40   :  { %v1749_v15 = vpop.eup %1748  ;;  %v1070_v16 = vadd.f32 1e-05, %v1068_v14  ;;  %v1644_v14 = vld [vmem:[%s2260_s8 + $0x8] sm:$0xff] }
 0xd41   :  { %v1072_v17 = vmul.f32 %v1749_v15, %v1069_v12  ;;  %vm1078_vm8 = vweird.f32 %v1749_v15  ;;  %v1646_v12 = vld [vmem:[%s2260_s8 + $0x18] sm:$0xff] }
 0xd42   :  { %1750 = vrsqrt.f32 %v1070_v16  ;;  %vm1079_vm10 = vmor %vm1077_vm9, %vm1078_vm8  ;;  %vm1087_vm14 = vweird.f32 %v1070_v16  ;;  %1314 = vmatpush.bf16.msrb.mxu0 %v1646_v12 }
 0xd43   :  { %v1073_v18 = vmul.f32 %v1749_v15, %v1072_v17 }
 0xd45   :  { %v1074_v19 = vmul.f32 0.5, %v1073_v18  ;;  %v1643_v18 = vld [vmem:[%s2260_s8] sm:$0xff] }
 0xd46   :  { %1315 = vmatpush.bf16.msrb.mxu0 %v1645_v13 }
 0xd47   :  { %v1075_v21 = vsub.f32 1.5, %v1074_v19 }
 0xd48   :  { %v1751_v22 = vpop.eup %1750 }
 0xd49   :  { %v1076_v23 = vmul.f32 %v1749_v15, %v1075_v21  ;;  %v1082_v24 = vmul.f32 %v1751_v22, %v1070_v16  ;;  %vm1088_vm13 = vweird.f32 %v1751_v22 }
 0xd4a   :  { %vm1089_vm15 = vmor %vm1087_vm14, %vm1088_vm13  ;;  %1316 = vmatpush.bf16.msrb.mxu0 %v1644_v14 }
 0xd4b   :  { %v1083_v25 = vmul.f32 %v1751_v22, %v1082_v24  ;;  %v1080_v26 = vsel %vm1079_vm10, %v1749_v15, %v1076_v23 }
 0xd4c   :  { %v1091_v29 = vmul.f32 %v1080_v26, %v1057_v0 }
 0xd4d   :  { %v1084_v27 = vmul.f32 0.5, %v1083_v25 }
 0xd4e   :  { %v1094_v33 = vmul.f32 %v1697_v28, %v1091_v29  ;;  %1317 = vmatpush.bf16.msrb.mxu0 %v1643_v18 }
 0xd4f   :  { %v1085_v20 = vsub.f32 1.5, %v1084_v27 }
 0xd50   :  { %v1097_v43 = vadd.f32 %v1698_v32, %v1094_v33 }
 0xd51   :  { %v1086_v30 = vmul.f32 %v1751_v22, %v1085_v20 }
 0xd53   :  { %v1090_v31 = vsel %vm1089_vm15, %v1751_v22, %v1086_v30 }
 0xd54   :  { %v1092_v34 = vmul.f32 %v1090_v31, %v1058_v4 }
 0xd56   :  { %v1095_v35 = vmul.f32 %v1697_v28, %v1092_v34  ;;  %v1701_v34 = vld [vmem:[#allocation9 + $0xe] ss:$0 sm:$0xff] }
 0xd58   :  { %v1098_v37 = vadd.f32 %v1698_v32, %v1095_v35 }
 0xd5a   :  { %v1099_v38 = vpack.c.bf16 %v1098_v37, %v1097_v43 }
 0xd5c   :  { %1538 = vmatmul.msk.bf16.vlgmr.msrb.gmra.mxu2 %vm208_vm7, %v1099_v38 }
 0xddf   :  { %v1131_v42 = vpop.f32.mrf.mxu2 }
 0xde0   :  { %v1132_v46 = vadd.f32 %v1699_v44, %v1131_v42 }
 0xde2   :  { %v1136_v49 = vmax.f32 %v1132_v46, 0.0 }
 0xde7   :  { %v1133_v47 = vpop.f32.mrf.mxu2 }
 0xde8   :  { %v1134_v48 = vadd.f32 %v1699_v44, %v1133_v47 }
 0xdea   :  { %v1137_v50 = vmax.f32 %v1134_v48, 0.0 }
 0xdec   :  { %v1138_v51 = vpack.c.bf16 %v1137_v50, %v1136_v49  ;;  %v1652_v50 = vld [vmem:[%s2261_s9 + $0x18] sm:$0xff] }
 0xded   :  { %1371 = vmatpush.bf16.msra.mxu1 %v1652_v50 }
 0xdee   :  { %1563 = vmatmul.msk.bf16.vlgmr.msra.gmra.mxu3 %vm649_vm2, %v1138_v51  ;;  %v1651_v51 = vld [vmem:[%s2261_s9 + $0x10] sm:$0xff] }
 0xdf1   :  { %1372 = vmatpush.bf16.msra.mxu1 %v1651_v51 }
 0xe71   :  { %v1186_v53 = vpop.f32.mrf.mxu3 }
 0xe72   :  { %v1187_v54 = vadd.f32 %v1700_v52, %v1186_v53  ;;  %v1703_v53 = vld [vmem:[#allocation9 + $0x10] ss:$0 sm:$0xff] }
 0xe74   :  { %v1191_v56 = vadd.f32 %v1187_v54, %v1097_v43  ;;  %v1702_v43 = vld [vmem:[#allocation9 + $0xf] ss:$0 sm:$0xff] }
 0xe76   :  { %v1195_v55 = vsel %vm208_vm7, %v1191_v56, 0.0 }
 0xe77   :  { %1196 = vadd.xlane.f32.xlu2 %v1195_v55 }
 0xe79   :  { %v1188_v57 = vpop.f32.mrf.mxu3 }
 0xe7a   :  { %v1189_v58 = vadd.f32 %v1700_v52, %v1188_v57  ;;  %v1650_v52 = vld [vmem:[%s2261_s9 + $0x8] sm:$0xff] }
 0xe7b   :  { %1373 = vmatpush.bf16.msra.mxu1 %v1650_v52 }
 0xe7c   :  { %v1192_v59 = vadd.f32 %v1189_v58, %v1098_v37  ;;  %v1649_v58 = vld [vmem:[%s2261_s9] sm:$0xff] }
 0xe7e   :  { %v1198_v60 = vsel %vm208_vm7, %v1192_v59, 0.0 }
 0xe7f   :  { %1199 = vadd.xlane.f32.xlu1 %v1198_v60  ;;  %1374 = vmatpush.bf16.msra.mxu1 %v1649_v58  ;;  %v1655_v60 = vld [vmem:[#allocation7 + $0x10] sm:$0xff] }
 0xe98   :  { %1683 = vrot.lane.b32.xlu1 %v1682_v63, %s1883_s29 }
 0xeea   :  { %v1197_v0 = vpop.xlane.xlu2 %1196 }
 0xeeb   :  { %v1201_v1 = vmul.f32 %v1197_v0, %v2066_v36  ;;  %v1654_v0 = vld [vmem:[#allocation7 + $0x8] sm:$0xff] }
 0xeed   :  { %v1203_v2 = vsub.f32 %v1191_v56, %v1201_v1  ;;  %v1653_v1 = vld [vmem:[#allocation7] sm:$0xff] }
 0xeef   :  { %v1205_v3 = vmul.f32 %v1203_v2, %v1203_v2 }
 0xef1   :  { %v1207_v10 = vsel %vm208_vm7, %v1205_v3, 0.0 }
 0xef2   :  { %v1200_v4 = vpop.xlane.xlu1 %1199  ;;  %1208 = vadd.xlane.f32.xlu0 %v1207_v10 }
 0xef3   :  { %v1202_v5 = vmul.f32 %v1200_v4, %v2066_v36 }
 0xef5   :  { %v1204_v6 = vsub.f32 %v1192_v59, %v1202_v5  ;;  %v1656_v59 = vld [vmem:[#allocation7 + $0x18] sm:$0xff] }
 0xef6   :  { %1423 = vmatpush.bf16.msra.mxu2 %v1656_v59 }
 0xef7   :  { %v1206_v11 = vmul.f32 %v1204_v6, %v1204_v6 }
 0xef9   :  { %v1210_v7 = vsel %vm208_vm7, %v1206_v11, 0.0  ;;  %v1705_v11 = vld [vmem:[#allocation9 + $0x12] ss:$0 sm:$0xff] }
 0xefa   :  { %1211 = vadd.xlane.f32.xlu2 %v1210_v7  ;;  %1424 = vmatpush.bf16.msra.mxu2 %v1655_v60 }
 0xefe   :  { %1425 = vmatpush.bf16.msra.mxu2 %v1654_v0 }
 0xf02   :  { %1426 = vmatpush.bf16.msra.mxu2 %v1653_v1 }
 0xf0a   :  { %v1684_v39 = vpop.permute.xlu1 %1683 }
 0xf0b   :  { %v1686_v40 = vunpack.i.h.bf16 %v1684_v39  ;;  %v1685_v41 = vunpack.i.l.bf16 %v1684_v39 }
 0xf65   :  { %v1209_v15 = vpop.xlane.xlu0 %1208 }
 0xf66   :  { %v1213_v16 = vmul.f32 %v1209_v15, %v2066_v36 }
 0xf68   :  { %v1215_v17 = vadd.f32 1e-05, %v1213_v16 }
 0xf6a   :  { %1752 = vrsqrt.f32 %v1215_v17  ;;  %vm1223_vm1 = vweird.f32 %v1215_v17 }
 0xf6d   :  { %v1212_v19 = vpop.xlane.xlu2 %1211 }
 0xf6e   :  { %v1214_v21 = vmul.f32 %v1212_v19, %v2066_v36 }
 0xf70   :  { %v1753_v22 = vpop.eup %1752  ;;  %v1216_v23 = vadd.f32 1e-05, %v1214_v21 }
 0xf71   :  { %v1218_v24 = vmul.f32 %v1753_v22, %v1215_v17  ;;  %vm1224_vm0 = vweird.f32 %v1753_v22 }
 0xf72   :  { %1754 = vrsqrt.f32 %v1216_v23  ;;  %vm1225_vm3 = vmor %vm1223_vm1, %vm1224_vm0  ;;  %vm1233_vm5 = vweird.f32 %v1216_v23 }
 0xf73   :  { %v1219_v25 = vmul.f32 %v1753_v22, %v1218_v24 }
 0xf75   :  { %v1220_v26 = vmul.f32 0.5, %v1219_v25 }
 0xf77   :  { %v1221_v27 = vsub.f32 1.5, %v1220_v26 }
 0xf78   :  { %v1755_v20 = vpop.eup %1754 }
 0xf79   :  { %v1222_v28 = vmul.f32 %v1753_v22, %v1221_v27  ;;  %v1228_v29 = vmul.f32 %v1755_v20, %v1216_v23  ;;  %vm1234_vm4 = vweird.f32 %v1755_v20 }
 0xf7a   :  { %vm1235_vm6 = vmor %vm1233_vm5, %vm1234_vm4 }
 0xf7b   :  { %v1226_v30 = vsel %vm1225_vm3, %v1753_v22, %v1222_v28  ;;  %v1229_v31 = vmul.f32 %v1755_v20, %v1228_v29 }
 0xf7c   :  { %v1237_v33 = vmul.f32 %v1226_v30, %v1203_v2  ;;  %v1704_v2 = vld [vmem:[#allocation9 + $0x11] ss:$0 sm:$0xff] }
 0xf7d   :  { %v1230_v32 = vmul.f32 0.5, %v1229_v31 }
 0xf7e   :  { %v1240_v37 = vmul.f32 %v1701_v34, %v1237_v33 }
 0xf7f   :  { %v1231_v35 = vsub.f32 1.5, %v1230_v32 }
 0xf80   :  { %v1243_v44 = vadd.f32 %v1702_v43, %v1240_v37 }
 0xf81   :  { %v1232_v36 = vmul.f32 %v1755_v20, %v1231_v35 }
 0xf82   :  { %v1253_v47 = vsel %vm208_vm7, %v1243_v44, %v1685_v41 }
 0xf83   :  { %v1236_v38 = vsel %vm1235_vm6, %v1755_v20, %v1232_v36 }
 0xf84   :  { %v1238_v45 = vmul.f32 %v1236_v38, %v1204_v6 }
 0xf86   :  { %v1241_v42 = vmul.f32 %v1701_v34, %v1238_v45 }
 0xf88   :  { %v1244_v46 = vadd.f32 %v1702_v43, %v1241_v42 }
 0xf8a   :  { %v1254_v48 = vsel %vm208_vm7, %v1244_v46, %v1686_v40 }
 0xf8b   :  { %v1255_v49 = vpack.c.bf16 %v1254_v48, %v1253_v47 }
 0xf8d   :  { %1588 = vmatmul.msk.bf16.vlgmr.msrb.gmra.mxu0 %vm1306_vm11, %v1255_v49 }
0x100a   :  { %v1319_v54 = vpop.f32.mrf.mxu0 }
0x100b   :  { %v1320_v56 = vadd.f32 %v1703_v53, %v1319_v54 }
0x1012   :  { %v1321_v55 = vpop.f32.mrf.mxu0 }
0x1013   :  { %v1322_v57 = vadd.f32 %v1703_v53, %v1321_v55 }
0x1015   :  { %1325 = vrot.lane.b32.xlu0 %v1322_v57, %s1883_s29 }
0x1087   :  { %v1326_v61 = vpop.permute.xlu0 %1325 }
0x1088   :  { %v1328_v62 = vsel %vm208_vm7, %v1320_v56, %v1326_v61 }
0x1089   :  { %v1329_v63 = vpack.c.bf16 %v1328_v62, %v1328_v62 }
0x108b   :  { %1605 = vmatmul.msk.bf16.vlgmr.msra.gmra.mxu1 %vm649_vm2, %v1329_v63 }
0x1108   :  { %v1376_v3 = vpop.f32.mrf.mxu1 }
0x1109   :  { %v1377_v10 = vadd.f32 %v1704_v2, %v1376_v3 }
0x110b   :  { %v1380_v4 = vmax.f32 %v1377_v10, 0.0 }
0x110d   :  { %v1381_v5 = vpack.c.bf16 %v1380_v4, %v1380_v4 }
0x110f   :  { %1622 = vmatmul.msk.bf16.vlgmr.msra.gmra.mxu2 %vm649_vm2, %v1381_v5 }
0x1110   :  { %v1378_v6 = vpop.f32.mrf.mxu1 }
0x1192   :  { %v1428_v7 = vpop.f32.mrf.mxu2 }
0x1193   :  { %v1429_v8 = vadd.f32 %v1705_v11, %v1428_v7 }
0x1195   :  { %1432 = vst [vmem:[%s2264_s12] sm:$0xff] %v1429_v8 }
0x119a   :  { %v1430_v9 = vpop.f32.mrf.mxu2 }
0x119b   :  { %1437 = vsyncpa [#allocation3], 1 }
0x119c   :  { %1438 = vsyncpa [#allocation5], 1 }
0x119d   :  { %1439 = vsyncpa [#allocation8], 1 }

</bundles_post_ra>
